<compile_context>
chip_gen: v6e
topology: v6e:2x2x1
jax: 0.10.0
libtpu: 0.0.40
codegen_flags: <defaults>
</compile_context>

<pallas_src>
import jax
import jax.numpy as jnp
from jax.experimental import pallas as pl
from jax.experimental.pallas import tpu as pltpu


# ----------------------------- small helpers --------------------------------

def _round_up(x: int, m: int) -> int:
    return ((x + m - 1) // m) * m


def _gelu_tanh(x):
    # TODO(synk): F.gelu defaults to the exact erf GELU; tanh-approx is used
    # here (<=~1e-3 abs diff) because tanh lowers to the EUP on all Mosaic
    # versions, while erf lowering availability varies.
    c = jnp.float32(0.7978845608028654)  # sqrt(2/pi)
    return 0.5 * x * (1.0 + jnp.tanh(c * (x + 0.044715 * x * x * x)))


def normalized_adjacency(edge_index: jnp.ndarray, num_nodes: int) -> jnp.ndarray:
    """Dense A_hat = D^-1/2 (A + I) D^-1/2, matching GCNConv's gcn_norm."""
    src, dst = edge_index[0], edge_index[1]
    a = jnp.zeros((num_nodes, num_nodes), dtype=jnp.float32)
    a = a.at[dst, src].set(1.0)                                  # message src -> dst
    a = jnp.maximum(a, jnp.eye(num_nodes, dtype=jnp.float32))    # add self-loops
    deg = jnp.sum(a, axis=1)                                     # >= 1 (self loop)
    d_inv_sqrt = 1.0 / jnp.sqrt(deg)
    return d_inv_sqrt[:, None] * a * d_inv_sqrt[None, :]


def fold_gcn_params(edge_index, num_joints, w1, b1, w2, b2):
    """Hoisted out of the per-forward path: fold A_hat into the weights once.

    per-frame  A_hat @ X @ W  ==  flatten(X) @ kron(A_hat.T, W)
    Weights are stored bf16 (MXU-native operands, half the VMEM/HBM bytes);
    biases stay f32 (tiny, added to the f32 accumulator anyway).
    """
    a_hat = normalized_adjacency(edge_index, num_joints)                    # (J, J)
    m1 = jnp.kron(a_hat.T, w1.astype(jnp.float32)).astype(jnp.bfloat16)     # (J*Din, J*H)
    m2 = jnp.kron(a_hat.T, w2.astype(jnp.float32)).astype(jnp.bfloat16)     # (J*H,  J*Hout)
    b1t = jnp.tile(b1.astype(jnp.float32), num_joints).reshape(1, -1)       # (1, J*H)
    b2t = jnp.tile(b2.astype(jnp.float32), num_joints).reshape(1, -1)       # (1, J*Hout)
    return dict(m1=m1, b1=b1t, m2=m2, b2=b2t, num_joints=num_joints)


def _vmem_budget_bytes() -> int:
    """Per-core VMEM budget with headroom; falls back to v7x's 64 MiB/TC."""
    try:
        cap = int(pltpu.get_tpu_info().vmem_capacity_bytes)
    except Exception:
        cap = 64 * 1024 * 1024
    cap = min(max(cap, 32 * 1024 * 1024), 128 * 1024 * 1024)
    return (3 * cap) // 4


def _pick_row_tile(n_rows: int, per_row_bytes: int, fixed_bytes: int,
                   budget: int) -> int:
    """Largest 8-aligned row tile (<=1024) whose total VMEM (resident weights
    + double-buffered in/out blocks + hidden temps) fits the budget."""
    avail = budget - fixed_bytes
    if avail <= 0:
        cap = 8
    else:
        cap = max(8, (avail // max(per_row_bytes, 1)) // 8 * 8)
    want = min(1024, _round_up(max(n_rows, 1), 8))   # fat tiles amortize step cost
    return max(8, min(want, cap))


# ------------------------------- the kernel ---------------------------------

def _gcn_kernel(x_ref, m1_ref, b1_ref, m2_ref, b2_ref, o_ref):
    # x_ref : (TN, J*Din)   bf16 row-chunk of flattened frames
    # m1_ref: (J*Din, J*H)  bf16 kron(A_hat.T, W1)  -- VMEM-resident
    # b1_ref: (1, J*H)      f32 tiled bias
    # m2_ref: (J*H, J*Hout) bf16 kron(A_hat.T, W2)  -- VMEM-resident
    # b2_ref: (1, J*Hout)   f32 tiled bias
    # o_ref : (TN, J*Hout)
    h = jnp.dot(x_ref[...], m1_ref[...], preferred_element_type=jnp.float32)
    h = _gelu_tanh(h + b1_ref[...])
    y = jnp.dot(h.astype(m2_ref.dtype), m2_ref[...],
                preferred_element_type=jnp.float32)
    o_ref[...] = _gelu_tanh(y + b2_ref[...]).astype(o_ref.dtype)


# ------------------------------- the wrapper ---------------------------------

def gcn_feature_extractor_forward(x, params, *, row_tile=None,
                                  out_dtype=jnp.float32):
    """x: (B, T, J, Din). params from fold_gcn_params. Returns (B, T, J, Hout)."""
    B, T, J, Din = x.shape
    assert J == params["num_joints"]
    m1, b1t, m2, b2t = params["m1"], params["b1"], params["m2"], params["b2"]
    w_in, w_hid = m1.shape
    w_out = m2.shape[1]
    assert w_in == J * Din
    hout = w_out // J

    n = B * T
    x2d = x.astype(jnp.bfloat16).reshape(n, w_in)      # rows ordered (b, t)

    # --- VMEM accounting: resident weights + biases + per-row buffers --------
    out_bytes = jnp.dtype(out_dtype).itemsize
    per_row = (2 * 2 * w_in            # bf16 input block, double-buffered
               + 2 * out_bytes * w_out  # output block, double-buffered
               + 4 * w_hid              # f32 hidden temp
               + 2 * w_hid)             # bf16 re-cast of hidden for 2nd matmul
    fixed = (2 * (w_in * w_hid + w_hid * w_out)   # bf16 kron weights (single copy)
             + 4 * (w_hid + w_out))               # f32 biases
    budget = _vmem_budget_bytes()

    if row_tile is None:
        row_tile = _pick_row_tile(n, per_row, fixed, budget)
        # Balance tiles so the last grid step isn't mostly padding.
        steps = max(1, -(-n // row_tile))
        row_tile = max(8, _round_up(-(-n // steps), 8))
    else:
        row_tile = max(8, _round_up(row_tile, 8))

    n_pad = _round_up(n, row_tile)
    if n_pad != n:
        x2d = jnp.pad(x2d, ((0, n_pad - n), (0, 0)))   # zero rows, sliced off later

    grid = (n_pad // row_tile,)

    def _call(resident_consts: bool):
        x_spec = pl.BlockSpec((row_tile, w_in), lambda r: (r, 0))
        o_spec = pl.BlockSpec((row_tile, w_out), lambda r: (r, 0))
        if resident_consts:
            # Whole-array VMEM residency: copied once, single-buffered.
            const_specs = [pl.BlockSpec(memory_space=pltpu.MemorySpace.VMEM)
                           for _ in range(4)]
        else:
            # Fallback: constant-index blocked specs (default pipelining).
            const_specs = [
                pl.BlockSpec((w_in, w_hid), lambda r: (0, 0)),
                pl.BlockSpec((1, w_hid), lambda r: (0, 0)),
                pl.BlockSpec((w_hid, w_out), lambda r: (0, 0)),
                pl.BlockSpec((1, w_out), lambda r: (0, 0)),
            ]
        return pl.pallas_call(
            _gcn_kernel,
            out_shape=jax.ShapeDtypeStruct((n_pad, w_out), out_dtype),
            grid_spec=pltpu.PrefetchScalarGridSpec(
                num_scalar_prefetch=0,
                grid=grid,
                in_specs=[x_spec] + const_specs,
                out_specs=o_spec,
            ),
            compiler_params=pltpu.CompilerParams(
                # Row chunks are independent -> shards across v7x's two TCs.
                dimension_semantics=("parallel",),
                vmem_limit_bytes=int(budget),
            ),
        )(x2d, m1, b1t, m2, b2t)

    try:
        out2d = _call(True)
    except Exception:
        out2d = _call(False)

    return out2d[:n].reshape(B, T, J, hout)


# --------------------------- pure-JAX reference ------------------------------

def gcn_reference(x, edge_index, num_joints, w1, b1, w2, b2):
    a_hat = normalized_adjacency(edge_index, num_joints)
    hp = jax.lax.Precision.HIGHEST
    h = jnp.einsum('ij,btjd->btid', a_hat, x, precision=hp)
    h = jnp.einsum('btid,dh->btih', h, w1, precision=hp) + b1
    h = _gelu_tanh(h)
    y = jnp.einsum('ij,btjh->btih', a_hat, h, precision=hp)
    y = jnp.einsum('btih,hk->btik', y, w2, precision=hp) + b2
    return _gelu_tanh(y)


# ----------------------------------- test ------------------------------------

if __name__ == "__main__":
    B, T, J, Din, H, Hout = 2, 8, 16, 4, 32, 32   # small shapes; J*H = 512 (lane-dense)

    # Undirected chain skeleton over J joints: edges (i, i+1) both directions.
    fwd = jnp.arange(J - 1, dtype=jnp.int32)
    edge_index = jnp.stack(
        [jnp.concatenate([fwd, fwd + 1]), jnp.concatenate([fwd + 1, fwd])], axis=0)

    key = jax.random.PRNGKey(0)
    kx, k1, k2, k3, k4 = jax.random.split(key, 5)
    x = jax.random.normal(kx, (B, T, J, Din), dtype=jnp.float32)
    w1 = jax.random.normal(k1, (Din, H), dtype=jnp.float32) / jnp.sqrt(jnp.float32(Din))
    b1 = 0.1 * jax.random.normal(k2, (H,), dtype=jnp.float32)
    w2 = jax.random.normal(k3, (H, Hout), dtype=jnp.float32) / jnp.sqrt(jnp.float32(H))
    b2 = 0.1 * jax.random.normal(k4, (Hout,), dtype=jnp.float32)

    # Fold A_hat into the weights once (hoisted out of the forward path).
    params = fold_gcn_params(edge_index, J, w1, b1, w2, b2)

    out = gcn_feature_extractor_forward(x, params)
    out = jax.block_until_ready(out)

    ref = gcn_reference(x, edge_index, J, w1, b1, w2, b2)
    assert out.shape == (B, T, J, Hout)
    # Kernel feeds the MXU bf16 operands (f32 accumulation); reference is f32
    # HIGHEST precision, so allow bf16-level error on O(1) activations.
    assert jnp.allclose(out, ref, atol=3e-2, rtol=3e-2), (
        f"max abs diff {jnp.max(jnp.abs(out - ref))}")

    print("KERNEL_OK")
</pallas_src>

<mosaic_0001>
module attributes {stable_mosaic.version = 11 : i64} {
  func.func @_gcn_kernel(%arg0: i32, %arg1: memref<16x64xbf16, #tpu.memory_space<vmem>>, %arg2: memref<64x512xbf16, #tpu.memory_space<vmem>>, %arg3: memref<1x512xf32, #tpu.memory_space<vmem>>, %arg4: memref<512x512xbf16, #tpu.memory_space<vmem>>, %arg5: memref<1x512xf32, #tpu.memory_space<vmem>>, %arg6: memref<16x512xf32, #tpu.memory_space<vmem>>) attributes {dimension_semantics = [#tpu.dimension_semantics<parallel>], iteration_bounds = array<i64: 1>, scalar_prefetch = 0 : i64, scratch_operands = 0 : i64, tpu.core_type = #tpu.core_type<tc>, window_params = [{transform_indices = @transform_0, window_bounds = array<i64: 16, 64>}, {pipeline_mode = #tpu.pipeline_mode<synchronous>, transform_indices = @transform_1, window_bounds = array<i64: 64, 512>}, {pipeline_mode = #tpu.pipeline_mode<synchronous>, transform_indices = @transform_2, window_bounds = array<i64: 1, 512>}, {pipeline_mode = #tpu.pipeline_mode<synchronous>, transform_indices = @transform_3, window_bounds = array<i64: 512, 512>}, {pipeline_mode = #tpu.pipeline_mode<synchronous>, transform_indices = @transform_4, window_bounds = array<i64: 1, 512>}, {transform_indices = @transform_5, window_bounds = array<i64: 16, 512>}]} {
    %c0 = arith.constant 0 : index
    %c0_0 = arith.constant 0 : index
    %0 = vector.load %arg1[%c0, %c0_0] : memref<16x64xbf16, #tpu.memory_space<vmem>>, vector<16x64xbf16>
    %c0_1 = arith.constant 0 : index
    %c0_2 = arith.constant 0 : index
    %1 = vector.load %arg2[%c0_1, %c0_2] : memref<64x512xbf16, #tpu.memory_space<vmem>>, vector<64x512xbf16>
    %cst = arith.constant dense<0.000000e+00> : vector<16x512xf32>
    %2 = tpu.matmul %0, %1, %cst {dimension_numbers = #tpu.dot_dimension_numbers<[1], [0], [0], [1], [0, 0, 1, 1], [], []>} : vector<16x64xbf16>, vector<64x512xbf16>, vector<16x512xf32> -> vector<16x512xf32>
    %c0_3 = arith.constant 0 : index
    %c0_4 = arith.constant 0 : index
    %3 = vector.load %arg3[%c0_3, %c0_4] : memref<1x512xf32, #tpu.memory_space<vmem>>, vector<1x512xf32>
    %4 = vector.broadcast %3 : vector<1x512xf32> to vector<16x512xf32>
    %5 = arith.addf %2, %4 : vector<16x512xf32>
    %cst_5 = arith.constant 5.000000e-01 : f32
    %6 = vector.broadcast %cst_5 : f32 to vector<16x512xf32>
    %7 = arith.mulf %6, %5 : vector<16x512xf32>
    %cst_6 = arith.constant 4.471500e-02 : f32
    %8 = vector.broadcast %cst_6 : f32 to vector<16x512xf32>
    %9 = arith.mulf %8, %5 : vector<16x512xf32>
    %10 = arith.mulf %9, %5 : vector<16x512xf32>
    %11 = arith.mulf %10, %5 : vector<16x512xf32>
    %12 = arith.addf %5, %11 : vector<16x512xf32>
    %cst_7 = arith.constant 0.797884583 : f32
    %13 = vector.broadcast %cst_7 : f32 to vector<16x512xf32>
    %14 = arith.mulf %13, %12 : vector<16x512xf32>
    %15 = math.tanh %14 : vector<16x512xf32>
    %cst_8 = arith.constant 1.000000e+00 : f32
    %16 = vector.broadcast %cst_8 : f32 to vector<16x512xf32>
    %17 = arith.addf %16, %15 : vector<16x512xf32>
    %18 = arith.mulf %7, %17 : vector<16x512xf32>
    %19 = arith.truncf %18 : vector<16x512xf32> to vector<16x512xbf16>
    %c0_9 = arith.constant 0 : index
    %c0_10 = arith.constant 0 : index
    %20 = vector.load %arg4[%c0_9, %c0_10] : memref<512x512xbf16, #tpu.memory_space<vmem>>, vector<512x512xbf16>
    %cst_11 = arith.constant dense<0.000000e+00> : vector<16x512xf32>
    %21 = tpu.matmul %19, %20, %cst_11 {dimension_numbers = #tpu.dot_dimension_numbers<[1], [0], [0], [1], [0, 0, 1, 1], [], []>} : vector<16x512xbf16>, vector<512x512xbf16>, vector<16x512xf32> -> vector<16x512xf32>
    %c0_12 = arith.constant 0 : index
    %c0_13 = arith.constant 0 : index
    %22 = vector.load %arg5[%c0_12, %c0_13] : memref<1x512xf32, #tpu.memory_space<vmem>>, vector<1x512xf32>
    %23 = vector.broadcast %22 : vector<1x512xf32> to vector<16x512xf32>
    %24 = arith.addf %21, %23 : vector<16x512xf32>
    %cst_14 = arith.constant 5.000000e-01 : f32
    %25 = vector.broadcast %cst_14 : f32 to vector<16x512xf32>
    %26 = arith.mulf %25, %24 : vector<16x512xf32>
    %cst_15 = arith.constant 4.471500e-02 : f32
    %27 = vector.broadcast %cst_15 : f32 to vector<16x512xf32>
    %28 = arith.mulf %27, %24 : vector<16x512xf32>
    %29 = arith.mulf %28, %24 : vector<16x512xf32>
    %30 = arith.mulf %29, %24 : vector<16x512xf32>
    %31 = arith.addf %24, %30 : vector<16x512xf32>
    %cst_16 = arith.constant 0.797884583 : f32
    %32 = vector.broadcast %cst_16 : f32 to vector<16x512xf32>
    %33 = arith.mulf %32, %31 : vector<16x512xf32>
    %34 = math.tanh %33 : vector<16x512xf32>
    %cst_17 = arith.constant 1.000000e+00 : f32
    %35 = vector.broadcast %cst_17 : f32 to vector<16x512xf32>
    %36 = arith.addf %35, %34 : vector<16x512xf32>
    %37 = arith.mulf %26, %36 : vector<16x512xf32>
    %c0_18 = arith.constant 0 : index
    %c0_19 = arith.constant 0 : index
    %38 = vector.load %arg6[%c0_18, %c0_19] : memref<16x512xf32, #tpu.memory_space<vmem>>, vector<16x512xf32>
    tpu.vector_store %arg6[%c0_18, %c0_19], %37 {strides = array<i32>} : memref<16x512xf32, #tpu.memory_space<vmem>>, vector<16x512xf32>,
    return
  }
  func.func @transform_0(%arg0: i32) -> (i32, i32) {
    %c0_i32 = arith.constant 0 : i32
    %c0_i32_0 = arith.constant 0 : i32
    return %arg0, %c0_i32 : i32, i32
  }
  func.func @transform_1(%arg0: i32) -> (i32, i32) {
    %c0_i32 = arith.constant 0 : i32
    %c0_i32_0 = arith.constant 0 : i32
    %c0_i32_1 = arith.constant 0 : i32
    return %c0_i32, %c0_i32_0 : i32, i32
  }
  func.func @transform_2(%arg0: i32) -> (i32, i32) {
    %c0_i32 = arith.constant 0 : i32
    %c0_i32_0 = arith.constant 0 : i32
    %c0_i32_1 = arith.constant 0 : i32
    return %c0_i32, %c0_i32_0 : i32, i32
  }
  func.func @transform_3(%arg0: i32) -> (i32, i32) {
    %c0_i32 = arith.constant 0 : i32
    %c0_i32_0 = arith.constant 0 : i32
    %c0_i32_1 = arith.constant 0 : i32
    return %c0_i32, %c0_i32_0 : i32, i32
  }
  func.func @transform_4(%arg0: i32) -> (i32, i32) {
    %c0_i32 = arith.constant 0 : i32
    %c0_i32_0 = arith.constant 0 : i32
    %c0_i32_1 = arith.constant 0 : i32
    return %c0_i32, %c0_i32_0 : i32, i32
  }
  func.func @transform_5(%arg0: i32) -> (i32, i32) {
    %c0_i32 = arith.constant 0 : i32
    %c0_i32_0 = arith.constant 0 : i32
    return %arg0, %c0_i32 : i32, i32
  }
}

module attributes {stable_mosaic.version = 11 : i64} {
  func.func @_gcn_kernel(%arg0: i32, %arg1: memref<16x64xbf16, #tpu.memory_space<vmem>>, %arg2: memref<64x512xbf16, #tpu.memory_space<vmem>>, %arg3: memref<1x512xf32, #tpu.memory_space<vmem>>, %arg4: memref<512x512xbf16, #tpu.memory_space<vmem>>, %arg5: memref<1x512xf32, #tpu.memory_space<vmem>>, %arg6: memref<16x512xf32, #tpu.memory_space<vmem>>) attributes {dimension_semantics = [#tpu.dimension_semantics<parallel>], iteration_bounds = array<i64: 1>, scalar_prefetch = 0 : i64, scratch_operands = 0 : i64, tpu.core_type = #tpu.core_type<tc>, window_params = [{transform_indices = @transform_0, window_bounds = array<i64: 16, 64>}, {pipeline_mode = #tpu.pipeline_mode<synchronous>, transform_indices = @transform_1, window_bounds = array<i64: 64, 512>}, {pipeline_mode = #tpu.pipeline_mode<synchronous>, transform_indices = @transform_2, window_bounds = array<i64: 1, 512>}, {pipeline_mode = #tpu.pipeline_mode<synchronous>, transform_indices = @transform_3, window_bounds = array<i64: 512, 512>}, {pipeline_mode = #tpu.pipeline_mode<synchronous>, transform_indices = @transform_4, window_bounds = array<i64: 1, 512>}, {transform_indices = @transform_5, window_bounds = array<i64: 16, 512>}]} {
    %c0 = arith.constant 0 : index
    %c0_0 = arith.constant 0 : index
    %0 = vector.load %arg1[%c0, %c0_0] : memref<16x64xbf16, #tpu.memory_space<vmem>>, vector<16x64xbf16>
    %c0_1 = arith.constant 0 : index
    %c0_2 = arith.constant 0 : index
    %1 = vector.load %arg2[%c0_1, %c0_2] : memref<64x512xbf16, #tpu.memory_space<vmem>>, vector<64x512xbf16>
    %cst = arith.constant dense<0.000000e+00> : vector<16x512xf32>
    %2 = tpu.matmul %0, %1, %cst {dimension_numbers = #tpu.dot_dimension_numbers<[1], [0], [0], [1], [0, 0, 1, 1], [], []>} : vector<16x64xbf16>, vector<64x512xbf16>, vector<16x512xf32> -> vector<16x512xf32>
    %c0_3 = arith.constant 0 : index
    %c0_4 = arith.constant 0 : index
    %3 = vector.load %arg3[%c0_3, %c0_4] : memref<1x512xf32, #tpu.memory_space<vmem>>, vector<1x512xf32>
    %4 = vector.broadcast %3 : vector<1x512xf32> to vector<16x512xf32>
    %5 = arith.addf %2, %4 : vector<16x512xf32>
    %cst_5 = arith.constant 5.000000e-01 : f32
    %6 = vector.broadcast %cst_5 : f32 to vector<16x512xf32>
    %7 = arith.mulf %6, %5 : vector<16x512xf32>
    %cst_6 = arith.constant 4.471500e-02 : f32
    %8 = vector.broadcast %cst_6 : f32 to vector<16x512xf32>
    %9 = arith.mulf %8, %5 : vector<16x512xf32>
    %10 = arith.mulf %9, %5 : vector<16x512xf32>
    %11 = arith.mulf %10, %5 : vector<16x512xf32>
    %12 = arith.addf %5, %11 : vector<16x512xf32>
    %cst_7 = arith.constant 0.797884583 : f32
    %13 = vector.broadcast %cst_7 : f32 to vector<16x512xf32>
    %14 = arith.mulf %13, %12 : vector<16x512xf32>
    %15 = math.tanh %14 : vector<16x512xf32>
    %cst_8 = arith.constant 1.000000e+00 : f32
    %16 = vector.broadcast %cst_8 : f32 to vector<16x512xf32>
    %17 = arith.addf %16, %15 : vector<16x512xf32>
    %18 = arith.mulf %7, %17 : vector<16x512xf32>
    %19 = arith.truncf %18 : vector<16x512xf32> to vector<16x512xbf16>
    %c0_9 = arith.constant 0 : index
    %c0_10 = arith.constant 0 : index
    %20 = vector.load %arg4[%c0_9, %c0_10] : memref<512x512xbf16, #tpu.memory_space<vmem>>, vector<512x512xbf16>
    %cst_11 = arith.constant dense<0.000000e+00> : vector<16x512xf32>
    %21 = tpu.matmul %19, %20, %cst_11 {dimension_numbers = #tpu.dot_dimension_numbers<[1], [0], [0], [1], [0, 0, 1, 1], [], []>} : vector<16x512xbf16>, vector<512x512xbf16>, vector<16x512xf32> -> vector<16x512xf32>
    %c0_12 = arith.constant 0 : index
    %c0_13 = arith.constant 0 : index
    %22 = vector.load %arg5[%c0_12, %c0_13] : memref<1x512xf32, #tpu.memory_space<vmem>>, vector<1x512xf32>
    %23 = vector.broadcast %22 : vector<1x512xf32> to vector<16x512xf32>
    %24 = arith.addf %21, %23 : vector<16x512xf32>
    %cst_14 = arith.constant 5.000000e-01 : f32
    %25 = vector.broadcast %cst_14 : f32 to vector<16x512xf32>
    %26 = arith.mulf %25, %24 : vector<16x512xf32>
    %cst_15 = arith.constant 4.471500e-02 : f32
    %27 = vector.broadcast %cst_15 : f32 to vector<16x512xf32>
    %28 = arith.mulf %27, %24 : vector<16x512xf32>
    %29 = arith.mulf %28, %24 : vector<16x512xf32>
    %30 = arith.mulf %29, %24 : vector<16x512xf32>
    %31 = arith.addf %24, %30 : vector<16x512xf32>
    %cst_16 = arith.constant 0.797884583 : f32
    %32 = vector.broadcast %cst_16 : f32 to vector<16x512xf32>
    %33 = arith.mulf %32, %31 : vector<16x512xf32>
    %34 = math.tanh %33 : vector<16x512xf32>
    %cst_17 = arith.constant 1.000000e+00 : f32
    %35 = vector.broadcast %cst_17 : f32 to vector<16x512xf32>
    %36 = arith.addf %35, %34 : vector<16x512xf32>
    %37 = arith.mulf %26, %36 : vector<16x512xf32>
    %c0_18 = arith.constant 0 : index
    %c0_19 = arith.constant 0 : index
    %38 = vector.load %arg6[%c0_18, %c0_19] : memref<16x512xf32, #tpu.memory_space<vmem>>, vector<16x512xf32>
    tpu.vector_store %arg6[%c0_18, %c0_19], %37 {strides = array<i32>} : memref<16x512xf32, #tpu.memory_space<vmem>>, vector<16x512xf32>,
    return
  }
  func.func @transform_0(%arg0: i32) -> (i32, i32) {
    %c0_i32 = arith.constant 0 : i32
    %c0_i32_0 = arith.constant 0 : i32
    return %arg0, %c0_i32 : i32, i32
  }
  func.func @transform_1(%arg0: i32) -> (i32, i32) {
    %c0_i32 = arith.constant 0 : i32
    %c0_i32_0 = arith.constant 0 : i32
    %c0_i32_1 = arith.constant 0 : i32
    return %c0_i32, %c0_i32_0 : i32, i32
  }
  func.func @transform_2(%arg0: i32) -> (i32, i32) {
    %c0_i32 = arith.constant 0 : i32
    %c0_i32_0 = arith.constant 0 : i32
    %c0_i32_1 = arith.constant 0 : i32
    return %c0_i32, %c0_i32_0 : i32, i32
  }
  func.func @transform_3(%arg0: i32) -> (i32, i32) {
    %c0_i32 = arith.constant 0 : i32
    %c0_i32_0 = arith.constant 0 : i32
    %c0_i32_1 = arith.constant 0 : i32
    return %c0_i32, %c0_i32_0 : i32, i32
  }
  func.func @transform_4(%arg0: i32) -> (i32, i32) {
    %c0_i32 = arith.constant 0 : i32
    %c0_i32_0 = arith.constant 0 : i32
    %c0_i32_1 = arith.constant 0 : i32
    return %c0_i32, %c0_i32_0 : i32, i32
  }
  func.func @transform_5(%arg0: i32) -> (i32, i32) {
    %c0_i32 = arith.constant 0 : i32
    %c0_i32_0 = arith.constant 0 : i32
    return %arg0, %c0_i32 : i32, i32
  }
}

</mosaic_0001>

<bundles_post_ra>
// kernel: tpu_custom_call.1
= control target key start
LH: loop header
LB: loop body
LE: loop exit
PB: predicated region body
PF: predicated region fallthrough
CT: control target
= control target key end

     0   :  { %10 = vsyncpa [#allocation3], 0  ;;  %s2073_s0 = inlined_call_operand.hbm [shape: bf16[16,64], index: 0, kind: input, shape index: {}]   ;;  %s2074_s1 = inlined_call_operand.hbm [shape: bf16[64,512], index: 1, kind: input, shape index: {}]   ;;  %s2075_s2 = inlined_call_operand.hbm [shape: f32[1,512], index: 2, kind: input, shape index: {}]   ;;  %s2076_s3 = inlined_call_operand.hbm [shape: bf16[512,512], index: 3, kind: input, shape index: {}]   ;;  %s2077_s4 = inlined_call_operand.vmem [shape: f32[1,512], index: 4, kind: input, shape index: {}]   ;;  %s2078_s5 = inlined_call_operand.hbm [shape: f32[16,512], index: 5, kind: output, shape index: {}]  }
   0x1   :  { %11 = vsyncpa [#allocation6], 0 }
   0x2   :  { %12 = vsyncpa [#allocation9], 0 }
   0x3   :  { %13 = vsyncpa [#allocation4], 0  ;;  %s1943_s18 = smov [#allocation5]  }
   0x4   :  { %s31_s19 = sshll.u32 %s1943_s18, 4  ;;  %s32_s19 = int_to_ptr.vmem [resolvable:$true] %s31_s19 }
   0x5   :  { %s1843_s20 = scalar_lea.vmem %s32_s19, 2048  ;;  %p1848_p1 = scmp.lt.s32.totalorder %s32_s19, %s32_s19 }
   0x6   :  { %p1844_p0 = scmp.ne.s32.totalorder %s32_s19, %s1843_s20  ;;  %p1849_p2 = scmp.lt.s32.totalorder %s1843_s20, %s1843_s20 }
   0x8   :  { %p1850_p3 = por %p1849_p2, %p1848_p1 }
   0xa   :  { %p1851_p4 = pnand %p1850_p3, %p1844_p0 }
   0xc   :  { %1854 = shalt.err (!%p1851_p4)
}
   0xd   :  { %s1944_s21 = smov 256   ;;  %s1945_s22 = smov 16  }
   0xe   :  { %37 = dma.hbm_to_vmem [thread:$0]  %s2074_s1, 2048, %s32_s19, [#allocation6], %s1944_s21, %s1944_s21, %s1945_s22  }
   0xf   :  { %s1946_s25 = smov [#allocation2]  }
  0x10   :  { %s19_s26 = sshll.u32 %s1946_s25, 4  ;;  %s20_s26 = int_to_ptr.vmem [resolvable:$true] %s19_s26 }
  0x11   :  { %s1863_s27 = scalar_lea.vmem %s20_s26, 128  ;;  %p1868_p6 = scmp.lt.s32.totalorder %s20_s26, %s20_s26 }
  0x12   :  { %p1864_p5 = scmp.ne.s32.totalorder %s20_s26, %s1863_s27  ;;  %p1869_p7 = scmp.lt.s32.totalorder %s1863_s27, %s1863_s27 }
  0x14   :  { %p1870_p8 = por %p1869_p7, %p1868_p6 }
  0x16   :  { %p1871_p9 = pnand %p1870_p8, %p1864_p5 }
  0x18   :  { %1874 = shalt.err (!%p1871_p9)
}
  0x19   :  { %s1947_s28 = smov 64   ;;  %s1948_s29 = smov 4  }
  0x1a   :  { %25 = dma.hbm_to_vmem [thread:$0]  %s2073_s0, 128, %s20_s26, [#allocation3], %s1947_s28, %s1947_s28, %s1948_s29  }
  0x1b   :  { %s1949_s7 = smov [#allocation7]   ;;  %s1950_s9 = smov [#allocation8]  }
  0x1c   :  { %s44_s8 = sshll.u32 %s1949_s7, 4  ;;  %s53_s1 = sshll.u32 %s1950_s9, 4  ;;  %s45_s8 = int_to_ptr.vmem [resolvable:$true] %s44_s8  ;;  %s54_s1 = int_to_ptr.vmem [resolvable:$true] %s53_s1 }
  0x1d   :  { %s1883_s10 = scalar_lea.vmem %s45_s8, 64  ;;  %p1888_p11 = scmp.lt.s32.totalorder %s45_s8, %s45_s8 }
  0x1e   :  { %p1884_p10 = scmp.ne.s32.totalorder %s45_s8, %s1883_s10  ;;  %p1889_p12 = scmp.lt.s32.totalorder %s1883_s10, %s1883_s10 }
  0x20   :  { %p1890_p13 = por %p1889_p12, %p1888_p11 }
  0x22   :  { %p1891_p0 = pnand %p1890_p13, %p1884_p10 }
  0x24   :  { %1894 = shalt.err (!%p1891_p0)
}
  0x25   :  { %47 = dma.hbm_to_vmem [thread:$0]  %s2075_s2, 64, %s45_s8, [#allocation6]  }
  0x26   :  { %s1903_s13 = scalar_lea.vmem %s54_s1, 16384  ;;  %p1908_p2 = scmp.lt.s32.totalorder %s54_s1, %s54_s1 }
  0x27   :  { %p1904_p1 = scmp.ne.s32.totalorder %s54_s1, %s1903_s13  ;;  %p1909_p3 = scmp.lt.s32.totalorder %s1903_s13, %s1903_s13 }
  0x29   :  { %p1910_p4 = por %p1909_p3, %p1908_p2 }
  0x2b   :  { %p1911_p5 = pnand %p1910_p4, %p1904_p1 }
  0x2d   :  { %1914 = shalt.err (!%p1911_p5)
}
  0x2e   :  { %59 = dma.hbm_to_vmem [thread:$0]  %s2076_s3, 16384, %s54_s1, [#allocation9], %s1944_s21, %s1944_s21, %s1945_s22  }
  0x2f   :  { %1935 = dma.done.wait [#allocation3], 128  }
  0x30   :  { %1936 = vsyncadd [#allocation3], 4294967168 }
  0x31   :  { %1937 = dma.done.wait [#allocation6], 2112  }
  0x32   :  { %1938 = vsyncadd [#allocation6], 4294965184 }
  0x33   :  { %1939 = dma.done.wait [#allocation9], 16384  }
  0x34   :  { %1940 = vsyncadd [#allocation9], 4294950912  ;;  %v1951_v0 = vmov 0   ;;  %v1586_v1 = vld [vmem:[#allocation5 + $0x64] ss:$16 sps:$4 sm:$0xff]   ;;  %v1610_v19 = vld [vmem:[#allocation2] sm:$0xff]  }
  0x35   :  { %236 = vmatprep.mubr.bf16.mxu0 %v1951_v0  ;;  %279 = vmatprep.mubr.bf16.mxu1 %v1951_v0  ;;  %v1588_v2 = vld [vmem:[#allocation5 + $0x6c] ss:$16 sps:$4 sm:$0xff]   ;;  %v1590_v3 = vld [vmem:[#allocation5 + $0x60] ss:$16 sps:$4 sm:$0xff]   ;;  %v1591_v4 = vld [vmem:[#allocation5 + $0x68] ss:$16 sps:$4 sm:$0xff]  }
  0x36   :  { %212 = vmatprep.subr.bf16.mxu0 %v1586_v1  ;;  %255 = vmatprep.subr.bf16.mxu1 %v1588_v2  ;;  %v1592_v5 = vld [vmem:[#allocation5 + $0x44] ss:$16 sps:$4 sm:$0xff]   ;;  %v1594_v6 = vld [vmem:[#allocation5 + $0x4c] ss:$16 sps:$4 sm:$0xff]   ;;  %v1596_v7 = vld [vmem:[#allocation5 + $0x40] ss:$16 sps:$4 sm:$0xff]  }
  0x37   :  { %213 = vmatpush1.bf16.msra.mxu0 %v1590_v3  ;;  %256 = vmatpush1.bf16.msra.mxu1 %v1591_v4  ;;  %v1597_v8 = vld [vmem:[#allocation5 + $0x48] ss:$16 sps:$4 sm:$0xff]   ;;  %v1598_v9 = vld [vmem:[#allocation5 + $0x24] ss:$16 sps:$4 sm:$0xff]   ;;  %v1600_v10 = vld [vmem:[#allocation5 + $0x2c] ss:$16 sps:$4 sm:$0xff]  }
  0x38   :  { %214 = vmatprep.subr.bf16.mxu0 %v1592_v5  ;;  %257 = vmatprep.subr.bf16.mxu1 %v1594_v6  ;;  %v1602_v11 = vld [vmem:[#allocation5 + $0x20] ss:$16 sps:$4 sm:$0xff]   ;;  %v1603_v12 = vld [vmem:[#allocation5 + $0x28] ss:$16 sps:$4 sm:$0xff]   ;;  %v1604_v13 = vld [vmem:[#allocation5 + $0x4] ss:$16 sps:$4 sm:$0xff]  }
  0x39   :  { %v1606_v14 = vld [vmem:[#allocation5 + $0xc] ss:$16 sps:$4 sm:$0xff]   ;;  %v1608_v15 = vld [vmem:[#allocation5] ss:$16 sps:$4 sm:$0xff]   ;;  %v1609_v16 = vld [vmem:[#allocation5 + $0x8] ss:$16 sps:$4 sm:$0xff]  }
  0x3a   :  { %v1613_v17 = vld [vmem:[#allocation8 + $0xe4] ss:$16 sps:$4 sm:$0xff]   ;;  %v1611_v20 = vld [vmem:[#allocation8 + $0xe0] ss:$16 sps:$4 sm:$0xff]   ;;  %vm200_vm0 = vcmask 523264  }
  0x3b   :  { %215 = vmatpush1.bf16.msra.mxu0 %v1596_v7  ;;  %258 = vmatpush1.bf16.msra.mxu1 %v1597_v8  ;;  %v1616_v18 = vld [vmem:[#allocation8 + $0x2e4] ss:$16 sps:$4 sm:$0xff]   ;;  %v1614_v21 = vld [vmem:[#allocation8 + $0x2e0] ss:$16 sps:$4 sm:$0xff]  }
  0x3c   :  { %216 = vmatprep.subr.bf16.mxu0 %v1598_v9  ;;  %259 = vmatprep.subr.bf16.mxu1 %v1600_v10  ;;  %v1619_v22 = vld [vmem:[#allocation8 + $0xc4] ss:$16 sps:$4 sm:$0xff]   ;;  %v1617_v24 = vld [vmem:[#allocation8 + $0xc0] ss:$16 sps:$4 sm:$0xff]  }
  0x3d   :  { %v1622_v23 = vld [vmem:[#allocation8 + $0x2c4] ss:$16 sps:$4 sm:$0xff]   ;;  %v1620_v25 = vld [vmem:[#allocation8 + $0x2c0] ss:$16 sps:$4 sm:$0xff]  }
  0x3e   :  { %v1625_v26 = vld [vmem:[#allocation8 + $0xa4] ss:$16 sps:$4 sm:$0xff]   ;;  %v1623_v28 = vld [vmem:[#allocation8 + $0xa0] ss:$16 sps:$4 sm:$0xff]  }
  0x3f   :  { %217 = vmatpush1.bf16.msra.mxu0 %v1602_v11  ;;  %260 = vmatpush1.bf16.msra.mxu1 %v1603_v12  ;;  %v1628_v27 = vld [vmem:[#allocation8 + $0x2a4] ss:$16 sps:$4 sm:$0xff]   ;;  %v1626_v29 = vld [vmem:[#allocation8 + $0x2a0] ss:$16 sps:$4 sm:$0xff]  }
  0x40   :  { %218 = vmatprep.subr.bf16.mxu0 %v1604_v13  ;;  %261 = vmatprep.subr.bf16.mxu1 %v1606_v14  ;;  %v1631_v30 = vld [vmem:[#allocation8 + $0x84] ss:$16 sps:$4 sm:$0xff]   ;;  %v1629_v32 = vld [vmem:[#allocation8 + $0x80] ss:$16 sps:$4 sm:$0xff]  }
  0x41   :  { %v1634_v31 = vld [vmem:[#allocation8 + $0x284] ss:$16 sps:$4 sm:$0xff]   ;;  %v1632_v33 = vld [vmem:[#allocation8 + $0x280] ss:$16 sps:$4 sm:$0xff]  }
  0x42   :  { %v1637_v34 = vld [vmem:[#allocation8 + $0x64] ss:$16 sps:$4 sm:$0xff]   ;;  %v1635_v36 = vld [vmem:[#allocation8 + $0x60] ss:$16 sps:$4 sm:$0xff]  }
  0x43   :  { %219 = vmatpush1.bf16.msra.mxu0 %v1608_v15  ;;  %262 = vmatpush1.bf16.msra.mxu1 %v1609_v16  ;;  %v1640_v35 = vld [vmem:[#allocation8 + $0x264] ss:$16 sps:$4 sm:$0xff]   ;;  %v1638_v37 = vld [vmem:[#allocation8 + $0x260] ss:$16 sps:$4 sm:$0xff]  }
  0x44   :  { %1156 = vmatprep.subr.bf16.mxu0 %v1613_v17  ;;  %1199 = vmatprep.subr.bf16.mxu1 %v1616_v18  ;;  %v1643_v38 = vld [vmem:[#allocation8 + $0x44] ss:$16 sps:$4 sm:$0xff]   ;;  %v1641_v40 = vld [vmem:[#allocation8 + $0x40] ss:$16 sps:$4 sm:$0xff]   ;;  %v1709_v18 = vld [vmem:[#allocation8 + $0xec] ss:$16 sps:$4 sm:$0xff]  }
  0x45   :  { %v1646_v39 = vld [vmem:[#allocation8 + $0x244] ss:$16 sps:$4 sm:$0xff]   ;;  %v1644_v41 = vld [vmem:[#allocation8 + $0x240] ss:$16 sps:$4 sm:$0xff]  }
  0x46   :  { %1444 = vmatmul.mubr.msk.bf16.vlgmr.msra.gmra.mxu0 %vm200_vm0, %v1610_v19  ;;  %1445 = vmatmul.mubr.msk.bf16.vlgmr.msra.gmra.mxu1 %vm200_vm0, %v1610_v19  ;;  %v1649_v42 = vld [vmem:[#allocation8 + $0x24] ss:$16 sps:$4 sm:$0xff]   ;;  %v1647_v44 = vld [vmem:[#allocation8 + $0x20] ss:$16 sps:$4 sm:$0xff]   ;;  %v1712_v19 = vld [vmem:[#allocation8 + $0x2ec] ss:$16 sps:$4 sm:$0xff]  }
  0x47   :  { %1157 = vmatpush1.bf16.msra.mxu0 %v1611_v20  ;;  %1200 = vmatpush1.bf16.msra.mxu1 %v1614_v21  ;;  %v1652_v43 = vld [vmem:[#allocation8 + $0x224] ss:$16 sps:$4 sm:$0xff]   ;;  %v1650_v45 = vld [vmem:[#allocation8 + $0x220] ss:$16 sps:$4 sm:$0xff]   ;;  %v95_v20 = vlaneseq }
  0x48   :  { %1158 = vmatprep.subr.bf16.mxu0 %v1619_v22  ;;  %1201 = vmatprep.subr.bf16.mxu1 %v1622_v23  ;;  %v1655_v46 = vld [vmem:[#allocation8 + $0x4] ss:$16 sps:$4 sm:$0xff]   ;;  %v1653_v48 = vld [vmem:[#allocation8] ss:$16 sps:$4 sm:$0xff]  }
  0x49   :  { %v1658_v47 = vld [vmem:[#allocation8 + $0x204] ss:$16 sps:$4 sm:$0xff]   ;;  %v1656_v49 = vld [vmem:[#allocation8 + $0x200] ss:$16 sps:$4 sm:$0xff]   ;;  %v2003_v21 = vshrl.u32 %v95_v20, 7 }
  0x4a   :  { %v1661_v50 = vld [vmem:[#allocation8 + $0x1e4] ss:$16 sps:$4 sm:$0xff]   ;;  %v1659_v52 = vld [vmem:[#allocation8 + $0x1e0] ss:$16 sps:$4 sm:$0xff]  }
  0x4b   :  { %1159 = vmatpush1.bf16.msra.mxu0 %v1617_v24  ;;  %1202 = vmatpush1.bf16.msra.mxu1 %v1620_v25  ;;  %v1664_v51 = vld [vmem:[#allocation8 + $0x3e4] ss:$16 sps:$4 sm:$0xff]   ;;  %v1662_v53 = vld [vmem:[#allocation8 + $0x3e0] ss:$16 sps:$4 sm:$0xff]   ;;  %v97_v22 = vsub.s32 0, %v2003_v21  ;;  %v105_v23 = vsub.s32 2, %v2003_v21 }
  0x4c   :  { %1160 = vmatprep.subr.bf16.mxu0 %v1625_v26  ;;  %1203 = vmatprep.subr.bf16.mxu1 %v1628_v27  ;;  %v1667_v54 = vld [vmem:[#allocation8 + $0x1c4] ss:$16 sps:$4 sm:$0xff]   ;;  %v1665_v56 = vld [vmem:[#allocation8 + $0x1c0] ss:$16 sps:$4 sm:$0xff]   ;;  %v93_v24 = vld [vmem:[#allocation7] sm:$0xf] }
  0x4d   :  { %v1670_v55 = vld [vmem:[#allocation8 + $0x3c4] ss:$16 sps:$4 sm:$0xff]   ;;  %v1668_v57 = vld [vmem:[#allocation8 + $0x3c0] ss:$16 sps:$4 sm:$0xff]   ;;  %v101_v25 = vsub.s32 1, %v2003_v21  ;;  %v109_v26 = vsub.s32 3, %v2003_v21  ;;  %v98_v27 = vrot.slane %v93_v24, %v97_v22 }
  0x4e   :  { %v1673_v58 = vld [vmem:[#allocation8 + $0x1a4] ss:$16 sps:$4 sm:$0xff]   ;;  %v1671_v60 = vld [vmem:[#allocation8 + $0x1a0] ss:$16 sps:$4 sm:$0xff]  }
  0x4f   :  { %1161 = vmatpush1.bf16.msra.mxu0 %v1623_v28  ;;  %1204 = vmatpush1.bf16.msra.mxu1 %v1626_v29  ;;  %v1676_v59 = vld [vmem:[#allocation8 + $0x3a4] ss:$16 sps:$4 sm:$0xff]   ;;  %v1674_v61 = vld [vmem:[#allocation8 + $0x3a0] ss:$16 sps:$4 sm:$0xff]   ;;  %v106_v28 = vrot.slane %v93_v24, %v105_v23  ;;  %v102_v29 = vrot.slane %v93_v24, %v101_v25 }
  0x50   :  { %1162 = vmatprep.subr.bf16.mxu0 %v1631_v30  ;;  %1205 = vmatprep.subr.bf16.mxu1 %v1634_v31  ;;  %v1677_v62 = vld [vmem:[#allocation8 + $0x180] ss:$16 sps:$4 sm:$0xff]   ;;  %v1679_v63 = vld [vmem:[#allocation8 + $0x184] ss:$16 sps:$4 sm:$0xff]   ;;  %v110_v30 = vrot.slane %v93_v24, %v109_v26 }
  0x51   :  { %v1680_v0 = vld [vmem:[#allocation8 + $0x380] ss:$16 sps:$4 sm:$0xff]   ;;  %v1682_v1 = vld [vmem:[#allocation8 + $0x384] ss:$16 sps:$4 sm:$0xff]  }
  0x52   :  { %v1685_v2 = vld [vmem:[#allocation8 + $0x164] ss:$16 sps:$4 sm:$0xff]   ;;  %v1683_v4 = vld [vmem:[#allocation8 + $0x160] ss:$16 sps:$4 sm:$0xff]  }
  0x53   :  { %1163 = vmatpush1.bf16.msra.mxu0 %v1629_v32  ;;  %1206 = vmatpush1.bf16.msra.mxu1 %v1632_v33  ;;  %v1688_v3 = vld [vmem:[#allocation8 + $0x364] ss:$16 sps:$4 sm:$0xff]   ;;  %v1686_v5 = vld [vmem:[#allocation8 + $0x360] ss:$16 sps:$4 sm:$0xff]  }
  0x54   :  { %1164 = vmatprep.subr.bf16.mxu0 %v1637_v34  ;;  %1207 = vmatprep.subr.bf16.mxu1 %v1640_v35  ;;  %v1691_v6 = vld [vmem:[#allocation8 + $0x144] ss:$16 sps:$4 sm:$0xff]   ;;  %v1689_v8 = vld [vmem:[#allocation8 + $0x140] ss:$16 sps:$4 sm:$0xff]  }
  0x55   :  { %v1694_v7 = vld [vmem:[#allocation8 + $0x344] ss:$16 sps:$4 sm:$0xff]   ;;  %v1692_v9 = vld [vmem:[#allocation8 + $0x340] ss:$16 sps:$4 sm:$0xff]  }
  0x56   :  { %v1697_v10 = vld [vmem:[#allocation8 + $0x124] ss:$16 sps:$4 sm:$0xff]   ;;  %v1695_v12 = vld [vmem:[#allocation8 + $0x120] ss:$16 sps:$4 sm:$0xff]  }
  0x57   :  { %1165 = vmatpush1.bf16.msra.mxu0 %v1635_v36  ;;  %1208 = vmatpush1.bf16.msra.mxu1 %v1638_v37  ;;  %v1700_v11 = vld [vmem:[#allocation8 + $0x324] ss:$16 sps:$4 sm:$0xff]   ;;  %v1698_v13 = vld [vmem:[#allocation8 + $0x320] ss:$16 sps:$4 sm:$0xff]  }
  0x58   :  { %1166 = vmatprep.subr.bf16.mxu0 %v1643_v38  ;;  %1209 = vmatprep.subr.bf16.mxu1 %v1646_v39  ;;  %v1703_v14 = vld [vmem:[#allocation8 + $0x104] ss:$16 sps:$4 sm:$0xff]   ;;  %v1701_v16 = vld [vmem:[#allocation8 + $0x100] ss:$16 sps:$4 sm:$0xff]  }
  0x59   :  { %v1706_v15 = vld [vmem:[#allocation8 + $0x304] ss:$16 sps:$4 sm:$0xff]   ;;  %v1704_v17 = vld [vmem:[#allocation8 + $0x300] ss:$16 sps:$4 sm:$0xff]  }
  0x5b   :  { %1167 = vmatpush1.bf16.msra.mxu0 %v1641_v40  ;;  %1210 = vmatpush1.bf16.msra.mxu1 %v1644_v41 }
  0x5c   :  { %1168 = vmatprep.subr.bf16.mxu0 %v1649_v42  ;;  %1211 = vmatprep.subr.bf16.mxu1 %v1652_v43 }
  0x5f   :  { %1169 = vmatpush1.bf16.msra.mxu0 %v1647_v44  ;;  %1212 = vmatpush1.bf16.msra.mxu1 %v1650_v45 }
  0x60   :  { %1170 = vmatprep.subr.bf16.mxu0 %v1655_v46  ;;  %1213 = vmatprep.subr.bf16.mxu1 %v1658_v47 }
  0x63   :  { %1171 = vmatpush1.bf16.msra.mxu0 %v1653_v48  ;;  %1214 = vmatpush1.bf16.msra.mxu1 %v1656_v49 }
  0x64   :  { %1172 = vmatprep.subr.bf16.mxu0 %v1661_v50  ;;  %1215 = vmatprep.subr.bf16.mxu1 %v1664_v51 }
  0x67   :  { %1173 = vmatpush2.bf16.msra.mxu0 %v1659_v52  ;;  %1216 = vmatpush2.bf16.msra.mxu1 %v1662_v53 }
  0x68   :  { %1174 = vmatprep.subr.bf16.mxu0 %v1667_v54  ;;  %1217 = vmatprep.subr.bf16.mxu1 %v1670_v55 }
  0x6b   :  { %1175 = vmatpush2.bf16.msra.mxu0 %v1665_v56  ;;  %1218 = vmatpush2.bf16.msra.mxu1 %v1668_v57 }
  0x6c   :  { %1176 = vmatprep.subr.bf16.mxu0 %v1673_v58  ;;  %1219 = vmatprep.subr.bf16.mxu1 %v1676_v59 }
  0x6f   :  { %1177 = vmatpush2.bf16.msra.mxu0 %v1671_v60  ;;  %1220 = vmatpush2.bf16.msra.mxu1 %v1674_v61 }
  0x70   :  { %1178 = vmatprep.subr.bf16.mxu0 %v1679_v63  ;;  %1221 = vmatprep.subr.bf16.mxu1 %v1682_v1 }
  0x73   :  { %1179 = vmatpush2.bf16.msra.mxu0 %v1677_v62  ;;  %1222 = vmatpush2.bf16.msra.mxu1 %v1680_v0 }
  0x74   :  { %1180 = vmatprep.subr.bf16.mxu0 %v1685_v2  ;;  %1223 = vmatprep.subr.bf16.mxu1 %v1688_v3 }
  0x77   :  { %1181 = vmatpush2.bf16.msra.mxu0 %v1683_v4  ;;  %1224 = vmatpush2.bf16.msra.mxu1 %v1686_v5 }
  0x78   :  { %1182 = vmatprep.subr.bf16.mxu0 %v1691_v6  ;;  %1225 = vmatprep.subr.bf16.mxu1 %v1694_v7 }
  0x7b   :  { %1183 = vmatpush2.bf16.msra.mxu0 %v1689_v8  ;;  %1226 = vmatpush2.bf16.msra.mxu1 %v1692_v9 }
  0x7c   :  { %1184 = vmatprep.subr.bf16.mxu0 %v1697_v10  ;;  %1227 = vmatprep.subr.bf16.mxu1 %v1700_v11 }
  0x7f   :  { %1185 = vmatpush2.bf16.msra.mxu0 %v1695_v12  ;;  %1228 = vmatpush2.bf16.msra.mxu1 %v1698_v13 }
  0x80   :  { %1186 = vmatprep.subr.bf16.mxu0 %v1703_v14  ;;  %1229 = vmatprep.subr.bf16.mxu1 %v1706_v15 }
  0x83   :  { %1187 = vmatpush2.bf16.msra.mxu0 %v1701_v16  ;;  %1230 = vmatpush2.bf16.msra.mxu1 %v1704_v17 }
  0x84   :  { %1242 = vmatprep.subr.bf16.mxu0 %v1709_v18  ;;  %1285 = vmatprep.subr.bf16.mxu1 %v1712_v19 }
 0x106   :  { %v238_v31 = vpop.f32.mrf.mxu0  ;;  %v281_v32 = vpop.f32.mrf.mxu1 }
 0x107   :  { %v2017_v33 = vadd.f32 %v238_v31, %v98_v27  ;;  %v2019_v34 = vadd.f32 %v281_v32, %v106_v28 }
 0x108   :  { %v240_v35 = vpop.f32.mrf.mxu0  ;;  %v283_v36 = vpop.f32.mrf.mxu1 }
 0x109   :  { %v298_v37 = vmul.f32 0.044715, %v2017_v33  ;;  %v300_v38 = vmul.f32 0.044715, %v2019_v34  ;;  %v241_v39 = vadd.f32 %v240_v35, %v102_v29  ;;  %v2023_v40 = vadd.f32 %v283_v36, %v110_v30 }
 0x10a   :  { %v242_v41 = vpop.f32.mrf.mxu0  ;;  %v285_v42 = vpop.f32.mrf.mxu1 }
 0x10b   :  { %v306_v43 = vmul.f32 %v298_v37, %v2017_v33  ;;  %v308_v44 = vmul.f32 %v300_v38, %v2019_v34  ;;  %v299_v45 = vmul.f32 0.044715, %v241_v39  ;;  %v301_v46 = vmul.f32 0.044715, %v2023_v40 }
 0x10c   :  { %v243_v47 = vadd.f32 %v242_v41, %v98_v27  ;;  %v2028_v48 = vadd.f32 %v285_v42, %v106_v28  ;;  %v244_v49 = vpop.f32.mrf.mxu0  ;;  %v287_v50 = vpop.f32.mrf.mxu1  ;;  %v291_v36 = vmul.f32 0.5, %v241_v39  ;;  %v290_v38 = vmul.f32 0.5, %v2017_v33 }
 0x10d   :  { %v314_v51 = vmul.f32 %v306_v43, %v2017_v33  ;;  %v316_v52 = vmul.f32 %v308_v44, %v2019_v34  ;;  %v307_v53 = vmul.f32 %v299_v45, %v241_v39  ;;  %v309_v54 = vmul.f32 %v301_v46, %v2023_v40 }
 0x10e   :  { %v302_v55 = vmul.f32 0.044715, %v243_v47  ;;  %v304_v56 = vmul.f32 0.044715, %v2028_v48  ;;  %v245_v57 = vadd.f32 %v244_v49, %v102_v29  ;;  %v288_v58 = vadd.f32 %v287_v50, %v110_v30 }
 0x10f   :  { %v322_v59 = vadd.f32 %v314_v51, %v2017_v33  ;;  %v324_v60 = vadd.f32 %v316_v52, %v2019_v34  ;;  %v315_v61 = vmul.f32 %v307_v53, %v241_v39  ;;  %v317_v62 = vmul.f32 %v309_v54, %v2023_v40 }
 0x110   :  { %v310_v63 = vmul.f32 %v302_v55, %v243_v47  ;;  %v312_v0 = vmul.f32 %v304_v56, %v2028_v48  ;;  %v303_v1 = vmul.f32 0.044715, %v245_v57  ;;  %v305_v2 = vmul.f32 0.044715, %v288_v58 }
 0x111   :  { %v330_v3 = vmul.f32 0.7978846, %v322_v59  ;;  %v332_v4 = vmul.f32 0.7978846, %v324_v60  ;;  %v323_v5 = vadd.f32 %v315_v61, %v241_v39  ;;  %v325_v11 = vadd.f32 %v317_v62, %v2023_v40 }
 0x112   :  { %v318_v6 = vmul.f32 %v310_v63, %v243_v47  ;;  %v320_v7 = vmul.f32 %v312_v0, %v2028_v48  ;;  %v311_v8 = vmul.f32 %v303_v1, %v245_v57  ;;  %v313_v9 = vmul.f32 %v305_v2, %v288_v58  ;;  %v1707_v1 = vld [vmem:[#allocation8 + $0xe8] ss:$16 sps:$4 sm:$0xff]  }
 0x113   :  { %v331_v10 = vmul.f32 0.7978846, %v323_v5  ;;  %1803 = vtanh.f32 %v330_v3  ;;  %v333_v16 = vmul.f32 0.7978846, %v325_v11  ;;  %v294_v44 = vmul.f32 0.5, %v243_v47 }
 0x114   :  { %v326_v12 = vadd.f32 %v318_v6, %v243_v47  ;;  %v328_v13 = vadd.f32 %v320_v7, %v2028_v48  ;;  %v319_v14 = vmul.f32 %v311_v8, %v245_v57  ;;  %1805 = vtanh.f32 %v332_v4  ;;  %v1710_v3 = vld [vmem:[#allocation8 + $0x2e8] ss:$16 sps:$4 sm:$0xff]   ;;  %v1718_v4 = vld [vmem:[#allocation8 + $0x2cc] ss:$16 sps:$4 sm:$0xff]  }
 0x115   :  { %v321_v15 = vmul.f32 %v313_v9, %v288_v58  ;;  %1807 = vtanh.f32 %v331_v10  ;;  %v295_v50 = vmul.f32 0.5, %v245_v57  ;;  %v296_v52 = vmul.f32 0.5, %v2028_v48  ;;  %v1716_v5 = vld [vmem:[#allocation8 + $0x2c8] ss:$16 sps:$4 sm:$0xff]   ;;  %v1721_v6 = vld [vmem:[#allocation8 + $0xac] ss:$16 sps:$4 sm:$0xff]  }
 0x116   :  { %v334_v17 = vmul.f32 0.7978846, %v326_v12  ;;  %v336_v18 = vmul.f32 0.7978846, %v328_v13  ;;  %v327_v19 = vadd.f32 %v319_v14, %v245_v57  ;;  %1809 = vtanh.f32 %v333_v16  ;;  %v1724_v7 = vld [vmem:[#allocation8 + $0x2ac] ss:$16 sps:$4 sm:$0xff]  }
 0x117   :  { %v329_v20 = vadd.f32 %v321_v15, %v288_v58  ;;  %v293_v54 = vmul.f32 0.5, %v2023_v40  ;;  %v297_v55 = vmul.f32 0.5, %v288_v58  ;;  %v292_v33 = vmul.f32 0.5, %v2019_v34  ;;  %v1715_v58 = vld [vmem:[#allocation8 + $0xcc] ss:$16 sps:$4 sm:$0xff]  }
 0x118   :  { %1811 = vtanh.f32 %v334_v17  ;;  %v335_v24 = vmul.f32 0.7978846, %v327_v19  ;;  %v1713_v34 = vld [vmem:[#allocation8 + $0xc8] ss:$16 sps:$4 sm:$0xff]   ;;  %v1727_v10 = vld [vmem:[#allocation8 + $0x8c] ss:$16 sps:$4 sm:$0xff]  }
 0x119   :  { %1813 = vtanh.f32 %v336_v18  ;;  %v337_v27 = vmul.f32 0.7978846, %v329_v20  ;;  %v1719_v8 = vld [vmem:[#allocation8 + $0xa8] ss:$16 sps:$4 sm:$0xff]   ;;  %v1730_v11 = vld [vmem:[#allocation8 + $0x28c] ss:$16 sps:$4 sm:$0xff]  }
 0x11a   :  { %1815 = vtanh.f32 %v335_v24  ;;  %v1722_v9 = vld [vmem:[#allocation8 + $0x2a8] ss:$16 sps:$4 sm:$0xff]   ;;  %v1733_v14 = vld [vmem:[#allocation8 + $0x6c] ss:$16 sps:$4 sm:$0xff]  }
 0x11b   :  { %1817 = vtanh.f32 %v337_v27  ;;  %v1725_v12 = vld [vmem:[#allocation8 + $0x88] ss:$16 sps:$4 sm:$0xff]   ;;  %v1736_v15 = vld [vmem:[#allocation8 + $0x26c] ss:$16 sps:$4 sm:$0xff]  }
 0x11c   :  { %v1728_v13 = vld [vmem:[#allocation8 + $0x288] ss:$16 sps:$4 sm:$0xff]   ;;  %v1739_v18 = vld [vmem:[#allocation8 + $0x4c] ss:$16 sps:$4 sm:$0xff]  }
 0x11d   :  { %v1731_v16 = vld [vmem:[#allocation8 + $0x68] ss:$16 sps:$4 sm:$0xff]   ;;  %v1742_v19 = vld [vmem:[#allocation8 + $0x24c] ss:$16 sps:$4 sm:$0xff]  }
 0x11e   :  { %v1734_v17 = vld [vmem:[#allocation8 + $0x268] ss:$16 sps:$4 sm:$0xff]   ;;  %v1745_v27 = vld [vmem:[#allocation8 + $0x2c] ss:$16 sps:$4 sm:$0xff]  }
 0x11f   :  { %v1737_v20 = vld [vmem:[#allocation8 + $0x48] ss:$16 sps:$4 sm:$0xff]  }
 0x120   :  { %v1804_v28 = vpop.eup %1803  ;;  %v1740_v24 = vld [vmem:[#allocation8 + $0x248] ss:$16 sps:$4 sm:$0xff]  }
 0x121   :  { %v1806_v29 = vpop.eup %1805  ;;  %v346_v45 = vadd.f32 1.0, %v1804_v28  ;;  %v1748_v28 = vld [vmem:[#allocation8 + $0x22c] ss:$16 sps:$4 sm:$0xff]  }
 0x122   :  { %v1808_v30 = vpop.eup %1807  ;;  %v348_v53 = vadd.f32 1.0, %v1806_v29  ;;  %v1743_v29 = vld [vmem:[#allocation8 + $0x28] ss:$16 sps:$4 sm:$0xff]  }
 0x123   :  { %v1810_v31 = vpop.eup %1809  ;;  %v347_v37 = vadd.f32 1.0, %v1808_v30  ;;  %v354_v63 = vmul.f32 %v346_v45, %v290_v38  ;;  %v1746_v30 = vld [vmem:[#allocation8 + $0x228] ss:$16 sps:$4 sm:$0xff]   ;;  %v1760_v38 = vld [vmem:[#allocation8 + $0x3ec] ss:$16 sps:$4 sm:$0xff]  }
 0x124   :  { %v349_v43 = vadd.f32 1.0, %v1810_v31  ;;  %v356_v57 = vmul.f32 %v348_v53, %v292_v33  ;;  %v1751_v31 = vld [vmem:[#allocation8 + $0xc] ss:$16 sps:$4 sm:$0xff]   ;;  %v1761_v45 = vld [vmem:[#allocation8 + $0x1c8] ss:$16 sps:$4 sm:$0xff]  }
 0x125   :  { %v1812_v32 = vpop.eup %1811  ;;  %v355_v59 = vmul.f32 %v347_v37, %v291_v36  ;;  %v1752_v36 = vld [vmem:[#allocation8 + $0x208] ss:$16 sps:$4 sm:$0xff]   ;;  %v1757_v37 = vld [vmem:[#allocation8 + $0x1ec] ss:$16 sps:$4 sm:$0xff]  }
 0x126   :  { %v1814_v35 = vpop.eup %1813  ;;  %v350_v41 = vadd.f32 1.0, %v1812_v32  ;;  %v357_v62 = vmul.f32 %v349_v43, %v293_v54  ;;  %v1754_v32 = vld [vmem:[#allocation8 + $0x20c] ss:$16 sps:$4 sm:$0xff]   ;;  %v1782_v33 = vld [vmem:[#allocation8 + $0x368] ss:$16 sps:$4 sm:$0xff]  }
 0x127   :  { %v1816_v42 = vpop.eup %1815  ;;  %v352_v46 = vadd.f32 1.0, %v1814_v35  ;;  %v1749_v35 = vld [vmem:[#allocation8 + $0x8] ss:$16 sps:$4 sm:$0xff]   ;;  %v1763_v43 = vld [vmem:[#allocation8 + $0x1cc] ss:$16 sps:$4 sm:$0xff]  }
 0x128   :  { %v1818_v49 = vpop.eup %1817  ;;  %v351_v51 = vadd.f32 1.0, %v1816_v42  ;;  %v358_v39 = vmul.f32 %v350_v41, %v294_v44  ;;  %v1755_v41 = vld [vmem:[#allocation8 + $0x1e8] ss:$16 sps:$4 sm:$0xff]   ;;  %v1766_v44 = vld [vmem:[#allocation8 + $0x3cc] ss:$16 sps:$4 sm:$0xff]  }
 0x129   :  { %v353_v56 = vadd.f32 1.0, %v1818_v49  ;;  %v360_v61 = vmul.f32 %v352_v46, %v296_v52  ;;  %v1758_v42 = vld [vmem:[#allocation8 + $0x3e8] ss:$16 sps:$4 sm:$0xff]   ;;  %v1769_v49 = vld [vmem:[#allocation8 + $0x1ac] ss:$16 sps:$4 sm:$0xff]  }
 0x12a   :  { %v359_v60 = vmul.f32 %v351_v51, %v295_v50  ;;  %v2045_v48 = vpack.c.bf16 %v358_v39, %v354_v63  ;;  %v1764_v46 = vld [vmem:[#allocation8 + $0x3c8] ss:$16 sps:$4 sm:$0xff]   ;;  %v1772_v50 = vld [vmem:[#allocation8 + $0x3ac] ss:$16 sps:$4 sm:$0xff]  }
 0x12b   :  { %v361_v47 = vmul.f32 %v353_v56, %v297_v55  ;;  %v2047_v40 = vpack.c.bf16 %v360_v61, %v356_v57  ;;  %v1767_v51 = vld [vmem:[#allocation8 + $0x1a8] ss:$16 sps:$4 sm:$0xff]   ;;  %v1775_v53 = vld [vmem:[#allocation8 + $0x18c] ss:$16 sps:$4 sm:$0xff]  }
 0x12c   :  { %v363_v0 = vpack.c.bf16 %v359_v60, %v355_v59  ;;  %v1770_v52 = vld [vmem:[#allocation8 + $0x3a8] ss:$16 sps:$4 sm:$0xff]   ;;  %v1778_v54 = vld [vmem:[#allocation8 + $0x38c] ss:$16 sps:$4 sm:$0xff]  }
 0x12d   :  { %v365_v2 = vpack.c.bf16 %v361_v47, %v357_v62  ;;  %v1773_v55 = vld [vmem:[#allocation8 + $0x188] ss:$16 sps:$4 sm:$0xff]   ;;  %v1781_v39 = vld [vmem:[#allocation8 + $0x16c] ss:$16 sps:$4 sm:$0xff]  }
 0x12e   :  { %1188 = vmatprep.mubr.bf16.mxu0 %v363_v0  ;;  %v1776_v56 = vld [vmem:[#allocation8 + $0x388] ss:$16 sps:$4 sm:$0xff]   ;;  %v1784_v59 = vld [vmem:[#allocation8 + $0x36c] ss:$16 sps:$4 sm:$0xff]  }
 0x12f   :  { %1231 = vmatprep.mubr.bf16.mxu1 %v365_v2  ;;  %1189 = vmatmul.mubr.bf16.vlgmr.msra.gmra.mxu0 %v2045_v48  ;;  %v1779_v60 = vld [vmem:[#allocation8 + $0x168] ss:$16 sps:$4 sm:$0xff]   ;;  %v1787_v61 = vld [vmem:[#allocation8 + $0x14c] ss:$16 sps:$4 sm:$0xff]  }
 0x130   :  { %1232 = vmatmul.mubr.bf16.vlgmr.msra.gmra.mxu1 %v2047_v40  ;;  %1243 = vmatpush1.bf16.msra.mxu0 %v1707_v1  ;;  %v1790_v62 = vld [vmem:[#allocation8 + $0x34c] ss:$16 sps:$4 sm:$0xff]   ;;  %v1785_v47 = vld [vmem:[#allocation8 + $0x148] ss:$16 sps:$4 sm:$0xff]  }
 0x131   :  { %1286 = vmatpush1.bf16.msra.mxu1 %v1710_v3  ;;  %1274 = vmatprep.mubr.bf16.mxu0 %v363_v0  ;;  %v1788_v63 = vld [vmem:[#allocation8 + $0x348] ss:$16 sps:$4 sm:$0xff]   ;;  %v1793_v0 = vld [vmem:[#allocation8 + $0x12c] ss:$16 sps:$4 sm:$0xff]  }
 0x132   :  { %1317 = vmatprep.mubr.bf16.mxu1 %v365_v2  ;;  %1244 = vmatprep.subr.bf16.mxu0 %v1715_v58  ;;  %v1796_v1 = vld [vmem:[#allocation8 + $0x32c] ss:$16 sps:$4 sm:$0xff]   ;;  %v1791_v57 = vld [vmem:[#allocation8 + $0x128] ss:$16 sps:$4 sm:$0xff]  }
 0x133   :  { %1287 = vmatprep.subr.bf16.mxu1 %v1718_v4  ;;  %v1794_v2 = vld [vmem:[#allocation8 + $0x328] ss:$16 sps:$4 sm:$0xff]   ;;  %v1799_v3 = vld [vmem:[#allocation8 + $0x10c] ss:$16 sps:$4 sm:$0xff]  }
 0x134   :  { %1245 = vmatpush1.bf16.msra.mxu0 %v1713_v34  ;;  %v1802_v58 = vld [vmem:[#allocation8 + $0x30c] ss:$16 sps:$4 sm:$0xff]   ;;  %v1797_v4 = vld [vmem:[#allocation8 + $0x108] ss:$16 sps:$4 sm:$0xff]  }
 0x135   :  { %1288 = vmatpush1.bf16.msra.mxu1 %v1716_v5  ;;  %1246 = vmatprep.subr.bf16.mxu0 %v1721_v6  ;;  %v1800_v34 = vld [vmem:[#allocation8 + $0x308] ss:$16 sps:$4 sm:$0xff]   ;;  %v2056_v5 = vld [vmem:[%s2077_s4] sm:$0xf]  ;;  %s1952_s4 = smov [#allocation10]  }
 0x136   :  { %1289 = vmatprep.subr.bf16.mxu1 %v1724_v7  ;;  %v499_v6 = vrot.slane %v2056_v5, %v97_v22  ;;  %v503_v7 = vrot.slane %v2056_v5, %v101_v25  ;;  %s1413_s15 = sshll.u32 %s1952_s4, 4  ;;  %s1414_s15 = int_to_ptr.vmem [resolvable:$true] %s1413_s15 }
 0x137   :  { %s1915_s16 = scalar_lea.vmem %s1414_s15, 1024  ;;  %p1920_p7 = scmp.lt.s32.totalorder %s1414_s15, %s1414_s15 }
 0x138   :  { %1247 = vmatpush1.bf16.msra.mxu0 %v1719_v8  ;;  %p1916_p6 = scmp.ne.s32.totalorder %s1414_s15, %s1915_s16  ;;  %p1921_p8 = scmp.lt.s32.totalorder %s1915_s16, %s1915_s16 }
 0x139   :  { %1290 = vmatpush1.bf16.msra.mxu1 %v1722_v9  ;;  %1248 = vmatprep.subr.bf16.mxu0 %v1727_v10 }
 0x13a   :  { %1291 = vmatprep.subr.bf16.mxu1 %v1730_v11  ;;  %p1922_p9 = por %p1921_p8, %p1920_p7 }
 0x13c   :  { %1249 = vmatpush1.bf16.msra.mxu0 %v1725_v12  ;;  %p1923_p10 = pnand %p1922_p9, %p1916_p6 }
 0x13d   :  { %1292 = vmatpush1.bf16.msra.mxu1 %v1728_v13  ;;  %1250 = vmatprep.subr.bf16.mxu0 %v1733_v14 }
 0x13e   :  { %1293 = vmatprep.subr.bf16.mxu1 %v1736_v15 }
 0x140   :  { %1251 = vmatpush1.bf16.msra.mxu0 %v1731_v16 }
 0x141   :  { %1294 = vmatpush1.bf16.msra.mxu1 %v1734_v17  ;;  %1252 = vmatprep.subr.bf16.mxu0 %v1739_v18 }
 0x142   :  { %1295 = vmatprep.subr.bf16.mxu1 %v1742_v19 }
 0x144   :  { %1253 = vmatpush1.bf16.msra.mxu0 %v1737_v20 }
 0x145   :  { %1296 = vmatpush1.bf16.msra.mxu1 %v1740_v24  ;;  %1254 = vmatprep.subr.bf16.mxu0 %v1745_v27 }
 0x146   :  { %1297 = vmatprep.subr.bf16.mxu1 %v1748_v28 }
 0x148   :  { %1255 = vmatpush1.bf16.msra.mxu0 %v1743_v29 }
 0x149   :  { %1298 = vmatpush1.bf16.msra.mxu1 %v1746_v30  ;;  %1256 = vmatprep.subr.bf16.mxu0 %v1751_v31 }
 0x14a   :  { %1299 = vmatprep.subr.bf16.mxu1 %v1754_v32 }
 0x14c   :  { %1257 = vmatpush1.bf16.msra.mxu0 %v1749_v35 }
 0x14d   :  { %1300 = vmatpush1.bf16.msra.mxu1 %v1752_v36  ;;  %1258 = vmatprep.subr.bf16.mxu0 %v1757_v37 }
 0x14e   :  { %1301 = vmatprep.subr.bf16.mxu1 %v1760_v38 }
 0x150   :  { %1259 = vmatpush2.bf16.msra.mxu0 %v1755_v41 }
 0x151   :  { %1302 = vmatpush2.bf16.msra.mxu1 %v1758_v42  ;;  %1260 = vmatprep.subr.bf16.mxu0 %v1763_v43 }
 0x152   :  { %1303 = vmatprep.subr.bf16.mxu1 %v1766_v44 }
 0x154   :  { %1261 = vmatpush2.bf16.msra.mxu0 %v1761_v45 }
 0x155   :  { %1304 = vmatpush2.bf16.msra.mxu1 %v1764_v46  ;;  %1262 = vmatprep.subr.bf16.mxu0 %v1769_v49 }
 0x156   :  { %1305 = vmatprep.subr.bf16.mxu1 %v1772_v50 }
 0x158   :  { %1263 = vmatpush2.bf16.msra.mxu0 %v1767_v51 }
 0x159   :  { %1306 = vmatpush2.bf16.msra.mxu1 %v1770_v52  ;;  %1264 = vmatprep.subr.bf16.mxu0 %v1775_v53 }
 0x15a   :  { %1307 = vmatprep.subr.bf16.mxu1 %v1778_v54 }
 0x15c   :  { %1265 = vmatpush2.bf16.msra.mxu0 %v1773_v55 }
 0x15d   :  { %1308 = vmatpush2.bf16.msra.mxu1 %v1776_v56  ;;  %1266 = vmatprep.subr.bf16.mxu0 %v1781_v39 }
 0x15e   :  { %1309 = vmatprep.subr.bf16.mxu1 %v1784_v59 }
 0x160   :  { %1267 = vmatpush2.bf16.msra.mxu0 %v1779_v60 }
 0x161   :  { %1310 = vmatpush2.bf16.msra.mxu1 %v1782_v33  ;;  %1268 = vmatprep.subr.bf16.mxu0 %v1787_v61 }
 0x162   :  { %1311 = vmatprep.subr.bf16.mxu1 %v1790_v62 }
 0x164   :  { %1269 = vmatpush2.bf16.msra.mxu0 %v1785_v47 }
 0x165   :  { %1312 = vmatpush2.bf16.msra.mxu1 %v1788_v63  ;;  %1270 = vmatprep.subr.bf16.mxu0 %v1793_v0 }
 0x166   :  { %1313 = vmatprep.subr.bf16.mxu1 %v1796_v1 }
 0x168   :  { %1271 = vmatpush2.bf16.msra.mxu0 %v1791_v57  ;;  %v507_v57 = vrot.slane %v2056_v5, %v105_v23 }
 0x169   :  { %1314 = vmatpush2.bf16.msra.mxu1 %v1794_v2  ;;  %1272 = vmatprep.subr.bf16.mxu0 %v1799_v3  ;;  %v511_v2 = vrot.slane %v2056_v5, %v109_v26 }
 0x16a   :  { %1315 = vmatprep.subr.bf16.mxu1 %v1802_v58 }
 0x16c   :  { %1273 = vmatpush2.bf16.msra.mxu0 %v1797_v4 }
 0x16d   :  { %1316 = vmatpush2.bf16.msra.mxu1 %v1800_v34 }
 0x16f   :  { %1275 = vmatmul.mubr.bf16.vlgmr.msra.gmra.mxu0 %v2045_v48 }
 0x170   :  { %1318 = vmatmul.mubr.bf16.vlgmr.msra.gmra.mxu1 %v2047_v40 }
 0x1ef   :  { %v1190_v8 = vpop.f32.mrf.mxu0 }
 0x1f0   :  { %v1191_v9 = vadd.f32 %v1190_v8, %v499_v6  ;;  %v1233_v10 = vpop.f32.mrf.mxu1 }
 0x1f1   :  { %v1192_v11 = vpop.f32.mrf.mxu0 }
 0x1f2   :  { %v1234_v48 = vadd.f32 %v1233_v10, %v1191_v9  ;;  %v1193_v12 = vadd.f32 %v1192_v11, %v503_v7  ;;  %v1235_v40 = vpop.f32.mrf.mxu1 }
 0x1f3   :  { %v1194_v13 = vpop.f32.mrf.mxu0 }
 0x1f4   :  { %v1336_v14 = vmul.f32 0.044715, %v1234_v48  ;;  %v1236_v15 = vadd.f32 %v1235_v40, %v1193_v12  ;;  %v1195_v16 = vadd.f32 %v1194_v13, %v499_v6  ;;  %v1237_v17 = vpop.f32.mrf.mxu1  ;;  %v1328_v52 = vmul.f32 0.5, %v1234_v48 }
 0x1f5   :  { %v1196_v18 = vpop.f32.mrf.mxu0 }
 0x1f6   :  { %v1344_v19 = vmul.f32 %v1336_v14, %v1234_v48  ;;  %v1337_v20 = vmul.f32 0.044715, %v1236_v15  ;;  %v1238_v22 = vadd.f32 %v1237_v17, %v1195_v16  ;;  %v1197_v24 = vadd.f32 %v1196_v18, %v503_v7  ;;  %v1239_v29 = vpop.f32.mrf.mxu1 }
 0x1f7   :  { %v1329_v56 = vmul.f32 0.5, %v1236_v15 }
 0x1f8   :  { %v1352_v27 = vmul.f32 %v1344_v19, %v1234_v48  ;;  %v1345_v28 = vmul.f32 %v1337_v20, %v1236_v15  ;;  %v1340_v25 = vmul.f32 0.044715, %v1238_v22  ;;  %v1240_v30 = vadd.f32 %v1239_v29, %v1197_v24 }
 0x1f9   :  { %v1332_v33 = vmul.f32 0.5, %v1238_v22 }
 0x1fa   :  { %v1360_v31 = vadd.f32 %v1352_v27, %v1234_v48  ;;  %v1353_v32 = vmul.f32 %v1345_v28, %v1236_v15  ;;  %v1348_v35 = vmul.f32 %v1340_v25, %v1238_v22  ;;  %v1341_v36 = vmul.f32 0.044715, %v1240_v30 }
 0x1fb   :  { %v1333_v63 = vmul.f32 0.5, %v1240_v30 }
 0x1fc   :  { %v1368_v37 = vmul.f32 0.7978846, %v1360_v31  ;;  %v1361_v38 = vadd.f32 %v1353_v32, %v1236_v15  ;;  %v1356_v41 = vmul.f32 %v1348_v35, %v1238_v22  ;;  %v1349_v42 = vmul.f32 %v1341_v36, %v1240_v30 }
 0x1fe   :  { %1819 = vtanh.f32 %v1368_v37  ;;  %v1369_v43 = vmul.f32 0.7978846, %v1361_v38  ;;  %v1364_v44 = vadd.f32 %v1356_v41, %v1238_v22  ;;  %v1357_v45 = vmul.f32 %v1349_v42, %v1240_v30 }
 0x200   :  { %1821 = vtanh.f32 %v1369_v43  ;;  %v1372_v46 = vmul.f32 0.7978846, %v1364_v44  ;;  %v1365_v49 = vadd.f32 %v1357_v45, %v1240_v30 }
 0x202   :  { %1823 = vtanh.f32 %v1372_v46  ;;  %v1373_v50 = vmul.f32 0.7978846, %v1365_v49 }
 0x204   :  { %1825 = vtanh.f32 %v1373_v50 }
 0x20b   :  { %v1820_v51 = vpop.eup %1819 }
 0x20c   :  { %v1384_v53 = vadd.f32 1.0, %v1820_v51 }
 0x20d   :  { %v1822_v54 = vpop.eup %1821 }
 0x20e   :  { %v1392_v55 = vmul.f32 %v1384_v53, %v1328_v52  ;;  %v1385_v39 = vadd.f32 1.0, %v1822_v54 }
 0x20f   :  { %v1824_v59 = vpop.eup %1823 }
 0x210   :  { %1400 = vst [vmem:[#allocation10] sm:$0xff] %v1392_v55  ;;  %v1393_v60 = vmul.f32 %v1385_v39, %v1329_v56  ;;  %v1388_v61 = vadd.f32 1.0, %v1824_v59 }
 0x211   :  { %v1826_v62 = vpop.eup %1825 }
 0x212   :  { %1401 = vst [vmem:[#allocation10 + $0x8] sm:$0xff] %v1393_v60  ;;  %v1396_v47 = vmul.f32 %v1388_v61, %v1332_v33  ;;  %v1389_v0 = vadd.f32 1.0, %v1826_v62 }
 0x214   :  { %1404 = vst [vmem:[#allocation10 + $0x20] sm:$0xff] %v1396_v47  ;;  %v1397_v1 = vmul.f32 %v1389_v0, %v1333_v63 }
 0x216   :  { %1405 = vst [vmem:[#allocation10 + $0x28] sm:$0xff] %v1397_v1 }
 0x22f   :  { %v1276_v3 = vpop.f32.mrf.mxu0 }
 0x230   :  { %v1277_v58 = vadd.f32 %v1276_v3, %v507_v57  ;;  %v1319_v4 = vpop.f32.mrf.mxu1 }
 0x231   :  { %v1278_v34 = vpop.f32.mrf.mxu0 }
 0x232   :  { %v1320_v6 = vadd.f32 %v1319_v4, %v1277_v58  ;;  %v1279_v7 = vadd.f32 %v1278_v34, %v511_v2  ;;  %v1321_v8 = vpop.f32.mrf.mxu1 }
 0x233   :  { %v1280_v9 = vpop.f32.mrf.mxu0 }
 0x234   :  { %v1338_v10 = vmul.f32 0.044715, %v1320_v6  ;;  %v1322_v11 = vadd.f32 %v1321_v8, %v1279_v7  ;;  %v1281_v48 = vadd.f32 %v1280_v9, %v507_v57  ;;  %v1323_v12 = vpop.f32.mrf.mxu1  ;;  %v1330_v38 = vmul.f32 0.5, %v1320_v6 }
 0x235   :  { %v1282_v40 = vpop.f32.mrf.mxu0 }
 0x236   :  { %v1346_v13 = vmul.f32 %v1338_v10, %v1320_v6  ;;  %v1339_v14 = vmul.f32 0.044715, %v1322_v11  ;;  %v1324_v23 = vadd.f32 %v1323_v12, %v1281_v48  ;;  %v1283_v15 = vadd.f32 %v1282_v40, %v511_v2  ;;  %v1325_v5 = vpop.f32.mrf.mxu1 }
 0x237   :  { %v1331_v44 = vmul.f32 0.5, %v1322_v11 }
 0x238   :  { %v1354_v21 = vmul.f32 %v1346_v13, %v1320_v6  ;;  %v1347_v16 = vmul.f32 %v1339_v14, %v1322_v11  ;;  %v1342_v26 = vmul.f32 0.044715, %v1324_v23  ;;  %v1326_v17 = vadd.f32 %v1325_v5, %v1283_v15 }
 0x239   :  { %v1334_v50 = vmul.f32 0.5, %v1324_v23 }
 0x23a   :  { %v1362_v18 = vadd.f32 %v1354_v21, %v1320_v6  ;;  %v1355_v19 = vmul.f32 %v1347_v16, %v1322_v11  ;;  %v1350_v20 = vmul.f32 %v1342_v26, %v1324_v23  ;;  %v1343_v22 = vmul.f32 0.044715, %v1326_v17 }
 0x23b   :  { %v1335_v54 = vmul.f32 0.5, %v1326_v17 }
 0x23c   :  { %v1370_v24 = vmul.f32 0.7978846, %v1362_v18  ;;  %v1363_v27 = vadd.f32 %v1355_v19, %v1322_v11  ;;  %v1358_v28 = vmul.f32 %v1350_v20, %v1324_v23  ;;  %v1351_v25 = vmul.f32 %v1343_v22, %v1326_v17 }
 0x23e   :  { %1827 = vtanh.f32 %v1370_v24  ;;  %v1371_v29 = vmul.f32 0.7978846, %v1363_v27  ;;  %v1366_v30 = vadd.f32 %v1358_v28, %v1324_v23  ;;  %v1359_v31 = vmul.f32 %v1351_v25, %v1326_v17 }
 0x240   :  { %1829 = vtanh.f32 %v1371_v29  ;;  %v1374_v32 = vmul.f32 0.7978846, %v1366_v30  ;;  %v1367_v35 = vadd.f32 %v1359_v31, %v1326_v17 }
 0x242   :  { %1831 = vtanh.f32 %v1374_v32  ;;  %v1375_v36 = vmul.f32 0.7978846, %v1367_v35 }
 0x244   :  { %1833 = vtanh.f32 %v1375_v36 }
 0x24b   :  { %v1828_v37 = vpop.eup %1827 }
 0x24c   :  { %v1386_v41 = vadd.f32 1.0, %v1828_v37 }
 0x24d   :  { %v1830_v42 = vpop.eup %1829 }
 0x24e   :  { %v1394_v43 = vmul.f32 %v1386_v41, %v1330_v38  ;;  %v1387_v45 = vadd.f32 1.0, %v1830_v42 }
 0x24f   :  { %v1832_v46 = vpop.eup %1831 }
 0x250   :  { %1402 = vst [vmem:[#allocation10 + $0x10] sm:$0xff] %v1394_v43  ;;  %v1395_v49 = vmul.f32 %v1387_v45, %v1331_v44  ;;  %v1390_v51 = vadd.f32 1.0, %v1832_v46 }
 0x251   :  { %v1834_v52 = vpop.eup %1833 }
 0x252   :  { %1403 = vst [vmem:[#allocation10 + $0x18] sm:$0xff] %v1395_v49  ;;  %v1398_v53 = vmul.f32 %v1390_v51, %v1334_v50  ;;  %v1391_v55 = vadd.f32 1.0, %v1834_v52 }
 0x254   :  { %1406 = vst [vmem:[#allocation10 + $0x30] sm:$0xff] %v1398_v53  ;;  %v1399_v56 = vmul.f32 %v1391_v55, %v1335_v54 }
 0x256   :  { %1407 = vst [vmem:[#allocation10 + $0x38] sm:$0xff] %v1399_v56 }
 0x257   :  { %1926 = shalt.err (!%p1923_p10)
}
 0x258   :  { %s1953_s17 = smov 512   ;;  %s1954_s18 = smov 32  }
 0x259   :  { %1419 = dma.vmem_to_hbm [thread:$0]  %s1414_s15, 1024, %s2078_s5, [#allocation4], %s1953_s17, %s1953_s17, %s1954_s18  }
 0x25a   :  { %1941 = dma.done.wait [#allocation4], 1024  }
 0x25b   :  { %1942 = vsyncadd [#allocation4], 4294966272 }
 0x25c   :  { %1423 = vsyncpa [#allocation3], 1 }
 0x25d   :  { %1424 = vsyncpa [#allocation6], 1 }
 0x25e   :  { %1425 = vsyncpa [#allocation9], 1 }
 0x25f   :  { %1426 = vsyncpa [#allocation4], 1 }

// kernel: tpu_custom_call.1
= control target key start
LH: loop header
LB: loop body
LE: loop exit
PB: predicated region body
PF: predicated region fallthrough
CT: control target
= control target key end

     0   :  { %10 = vsyncpa [#allocation3], 0  ;;  %s2073_s0 = inlined_call_operand.hbm [shape: bf16[16,64], index: 0, kind: input, shape index: {}]   ;;  %s2074_s1 = inlined_call_operand.hbm [shape: bf16[64,512], index: 1, kind: input, shape index: {}]   ;;  %s2075_s2 = inlined_call_operand.hbm [shape: f32[1,512], index: 2, kind: input, shape index: {}]   ;;  %s2076_s3 = inlined_call_operand.hbm [shape: bf16[512,512], index: 3, kind: input, shape index: {}]   ;;  %s2077_s4 = inlined_call_operand.vmem [shape: f32[1,512], index: 4, kind: input, shape index: {}]   ;;  %s2078_s5 = inlined_call_operand.hbm [shape: f32[16,512], index: 5, kind: output, shape index: {}]  }
   0x1   :  { %11 = vsyncpa [#allocation6], 0 }
   0x2   :  { %12 = vsyncpa [#allocation9], 0 }
   0x3   :  { %13 = vsyncpa [#allocation4], 0  ;;  %s1943_s18 = smov [#allocation5]  }
   0x4   :  { %s31_s19 = sshll.u32 %s1943_s18, 4  ;;  %s32_s19 = int_to_ptr.vmem [resolvable:$true] %s31_s19 }
   0x5   :  { %s1843_s20 = scalar_lea.vmem %s32_s19, 2048  ;;  %p1848_p1 = scmp.lt.s32.totalorder %s32_s19, %s32_s19 }
   0x6   :  { %p1844_p0 = scmp.ne.s32.totalorder %s32_s19, %s1843_s20  ;;  %p1849_p2 = scmp.lt.s32.totalorder %s1843_s20, %s1843_s20 }
   0x8   :  { %p1850_p3 = por %p1849_p2, %p1848_p1 }
   0xa   :  { %p1851_p4 = pnand %p1850_p3, %p1844_p0 }
   0xc   :  { %1854 = shalt.err (!%p1851_p4)
}
   0xd   :  { %s1944_s21 = smov 256   ;;  %s1945_s22 = smov 16  }
   0xe   :  { %37 = dma.hbm_to_vmem [thread:$0]  %s2074_s1, 2048, %s32_s19, [#allocation6], %s1944_s21, %s1944_s21, %s1945_s22  }
   0xf   :  { %s1946_s25 = smov [#allocation2]  }
  0x10   :  { %s19_s26 = sshll.u32 %s1946_s25, 4  ;;  %s20_s26 = int_to_ptr.vmem [resolvable:$true] %s19_s26 }
  0x11   :  { %s1863_s27 = scalar_lea.vmem %s20_s26, 128  ;;  %p1868_p6 = scmp.lt.s32.totalorder %s20_s26, %s20_s26 }
  0x12   :  { %p1864_p5 = scmp.ne.s32.totalorder %s20_s26, %s1863_s27  ;;  %p1869_p7 = scmp.lt.s32.totalorder %s1863_s27, %s1863_s27 }
  0x14   :  { %p1870_p8 = por %p1869_p7, %p1868_p6 }
  0x16   :  { %p1871_p9 = pnand %p1870_p8, %p1864_p5 }
  0x18   :  { %1874 = shalt.err (!%p1871_p9)
}
  0x19   :  { %s1947_s28 = smov 64   ;;  %s1948_s29 = smov 4  }
  0x1a   :  { %25 = dma.hbm_to_vmem [thread:$0]  %s2073_s0, 128, %s20_s26, [#allocation3], %s1947_s28, %s1947_s28, %s1948_s29  }
  0x1b   :  { %s1949_s7 = smov [#allocation7]   ;;  %s1950_s9 = smov [#allocation8]  }
  0x1c   :  { %s44_s8 = sshll.u32 %s1949_s7, 4  ;;  %s53_s1 = sshll.u32 %s1950_s9, 4  ;;  %s45_s8 = int_to_ptr.vmem [resolvable:$true] %s44_s8  ;;  %s54_s1 = int_to_ptr.vmem [resolvable:$true] %s53_s1 }
  0x1d   :  { %s1883_s10 = scalar_lea.vmem %s45_s8, 64  ;;  %p1888_p11 = scmp.lt.s32.totalorder %s45_s8, %s45_s8 }
  0x1e   :  { %p1884_p10 = scmp.ne.s32.totalorder %s45_s8, %s1883_s10  ;;  %p1889_p12 = scmp.lt.s32.totalorder %s1883_s10, %s1883_s10 }
  0x20   :  { %p1890_p13 = por %p1889_p12, %p1888_p11 }
  0x22   :  { %p1891_p0 = pnand %p1890_p13, %p1884_p10 }
  0x24   :  { %1894 = shalt.err (!%p1891_p0)
}
  0x25   :  { %47 = dma.hbm_to_vmem [thread:$0]  %s2075_s2, 64, %s45_s8, [#allocation6]  }
  0x26   :  { %s1903_s13 = scalar_lea.vmem %s54_s1, 16384  ;;  %p1908_p2 = scmp.lt.s32.totalorder %s54_s1, %s54_s1 }
  0x27   :  { %p1904_p1 = scmp.ne.s32.totalorder %s54_s1, %s1903_s13  ;;  %p1909_p3 = scmp.lt.s32.totalorder %s1903_s13, %s1903_s13 }
  0x29   :  { %p1910_p4 = por %p1909_p3, %p1908_p2 }
  0x2b   :  { %p1911_p5 = pnand %p1910_p4, %p1904_p1 }
  0x2d   :  { %1914 = shalt.err (!%p1911_p5)
}
  0x2e   :  { %59 = dma.hbm_to_vmem [thread:$0]  %s2076_s3, 16384, %s54_s1, [#allocation9], %s1944_s21, %s1944_s21, %s1945_s22  }
  0x2f   :  { %1935 = dma.done.wait [#allocation3], 128  }
  0x30   :  { %1936 = vsyncadd [#allocation3], 4294967168 }
  0x31   :  { %1937 = dma.done.wait [#allocation6], 2112  }
  0x32   :  { %1938 = vsyncadd [#allocation6], 4294965184 }
  0x33   :  { %1939 = dma.done.wait [#allocation9], 16384  }
  0x34   :  { %1940 = vsyncadd [#allocation9], 4294950912  ;;  %v1951_v0 = vmov 0   ;;  %v1586_v1 = vld [vmem:[#allocation5 + $0x64] ss:$16 sps:$4 sm:$0xff]   ;;  %v1610_v19 = vld [vmem:[#allocation2] sm:$0xff]  }
  0x35   :  { %236 = vmatprep.mubr.bf16.mxu0 %v1951_v0  ;;  %279 = vmatprep.mubr.bf16.mxu1 %v1951_v0  ;;  %v1588_v2 = vld [vmem:[#allocation5 + $0x6c] ss:$16 sps:$4 sm:$0xff]   ;;  %v1590_v3 = vld [vmem:[#allocation5 + $0x60] ss:$16 sps:$4 sm:$0xff]   ;;  %v1591_v4 = vld [vmem:[#allocation5 + $0x68] ss:$16 sps:$4 sm:$0xff]  }
  0x36   :  { %212 = vmatprep.subr.bf16.mxu0 %v1586_v1  ;;  %255 = vmatprep.subr.bf16.mxu1 %v1588_v2  ;;  %v1592_v5 = vld [vmem:[#allocation5 + $0x44] ss:$16 sps:$4 sm:$0xff]   ;;  %v1594_v6 = vld [vmem:[#allocation5 + $0x4c] ss:$16 sps:$4 sm:$0xff]   ;;  %v1596_v7 = vld [vmem:[#allocation5 + $0x40] ss:$16 sps:$4 sm:$0xff]  }
  0x37   :  { %213 = vmatpush1.bf16.msra.mxu0 %v1590_v3  ;;  %256 = vmatpush1.bf16.msra.mxu1 %v1591_v4  ;;  %v1597_v8 = vld [vmem:[#allocation5 + $0x48] ss:$16 sps:$4 sm:$0xff]   ;;  %v1598_v9 = vld [vmem:[#allocation5 + $0x24] ss:$16 sps:$4 sm:$0xff]   ;;  %v1600_v10 = vld [vmem:[#allocation5 + $0x2c] ss:$16 sps:$4 sm:$0xff]  }
  0x38   :  { %214 = vmatprep.subr.bf16.mxu0 %v1592_v5  ;;  %257 = vmatprep.subr.bf16.mxu1 %v1594_v6  ;;  %v1602_v11 = vld [vmem:[#allocation5 + $0x20] ss:$16 sps:$4 sm:$0xff]   ;;  %v1603_v12 = vld [vmem:[#allocation5 + $0x28] ss:$16 sps:$4 sm:$0xff]   ;;  %v1604_v13 = vld [vmem:[#allocation5 + $0x4] ss:$16 sps:$4 sm:$0xff]  }
  0x39   :  { %v1606_v14 = vld [vmem:[#allocation5 + $0xc] ss:$16 sps:$4 sm:$0xff]   ;;  %v1608_v15 = vld [vmem:[#allocation5] ss:$16 sps:$4 sm:$0xff]   ;;  %v1609_v16 = vld [vmem:[#allocation5 + $0x8] ss:$16 sps:$4 sm:$0xff]  }
  0x3a   :  { %v1613_v17 = vld [vmem:[#allocation8 + $0xe4] ss:$16 sps:$4 sm:$0xff]   ;;  %v1611_v20 = vld [vmem:[#allocation8 + $0xe0] ss:$16 sps:$4 sm:$0xff]   ;;  %vm200_vm0 = vcmask 523264  }
  0x3b   :  { %215 = vmatpush1.bf16.msra.mxu0 %v1596_v7  ;;  %258 = vmatpush1.bf16.msra.mxu1 %v1597_v8  ;;  %v1616_v18 = vld [vmem:[#allocation8 + $0x2e4] ss:$16 sps:$4 sm:$0xff]   ;;  %v1614_v21 = vld [vmem:[#allocation8 + $0x2e0] ss:$16 sps:$4 sm:$0xff]  }
  0x3c   :  { %216 = vmatprep.subr.bf16.mxu0 %v1598_v9  ;;  %259 = vmatprep.subr.bf16.mxu1 %v1600_v10  ;;  %v1619_v22 = vld [vmem:[#allocation8 + $0xc4] ss:$16 sps:$4 sm:$0xff]   ;;  %v1617_v24 = vld [vmem:[#allocation8 + $0xc0] ss:$16 sps:$4 sm:$0xff]  }
  0x3d   :  { %v1622_v23 = vld [vmem:[#allocation8 + $0x2c4] ss:$16 sps:$4 sm:$0xff]   ;;  %v1620_v25 = vld [vmem:[#allocation8 + $0x2c0] ss:$16 sps:$4 sm:$0xff]  }
  0x3e   :  { %v1625_v26 = vld [vmem:[#allocation8 + $0xa4] ss:$16 sps:$4 sm:$0xff]   ;;  %v1623_v28 = vld [vmem:[#allocation8 + $0xa0] ss:$16 sps:$4 sm:$0xff]  }
  0x3f   :  { %217 = vmatpush1.bf16.msra.mxu0 %v1602_v11  ;;  %260 = vmatpush1.bf16.msra.mxu1 %v1603_v12  ;;  %v1628_v27 = vld [vmem:[#allocation8 + $0x2a4] ss:$16 sps:$4 sm:$0xff]   ;;  %v1626_v29 = vld [vmem:[#allocation8 + $0x2a0] ss:$16 sps:$4 sm:$0xff]  }
  0x40   :  { %218 = vmatprep.subr.bf16.mxu0 %v1604_v13  ;;  %261 = vmatprep.subr.bf16.mxu1 %v1606_v14  ;;  %v1631_v30 = vld [vmem:[#allocation8 + $0x84] ss:$16 sps:$4 sm:$0xff]   ;;  %v1629_v32 = vld [vmem:[#allocation8 + $0x80] ss:$16 sps:$4 sm:$0xff]  }
  0x41   :  { %v1634_v31 = vld [vmem:[#allocation8 + $0x284] ss:$16 sps:$4 sm:$0xff]   ;;  %v1632_v33 = vld [vmem:[#allocation8 + $0x280] ss:$16 sps:$4 sm:$0xff]  }
  0x42   :  { %v1637_v34 = vld [vmem:[#allocation8 + $0x64] ss:$16 sps:$4 sm:$0xff]   ;;  %v1635_v36 = vld [vmem:[#allocation8 + $0x60] ss:$16 sps:$4 sm:$0xff]  }
  0x43   :  { %219 = vmatpush1.bf16.msra.mxu0 %v1608_v15  ;;  %262 = vmatpush1.bf16.msra.mxu1 %v1609_v16  ;;  %v1640_v35 = vld [vmem:[#allocation8 + $0x264] ss:$16 sps:$4 sm:$0xff]   ;;  %v1638_v37 = vld [vmem:[#allocation8 + $0x260] ss:$16 sps:$4 sm:$0xff]  }
  0x44   :  { %1156 = vmatprep.subr.bf16.mxu0 %v1613_v17  ;;  %1199 = vmatprep.subr.bf16.mxu1 %v1616_v18  ;;  %v1643_v38 = vld [vmem:[#allocation8 + $0x44] ss:$16 sps:$4 sm:$0xff]   ;;  %v1641_v40 = vld [vmem:[#allocation8 + $0x40] ss:$16 sps:$4 sm:$0xff]   ;;  %v1709_v18 = vld [vmem:[#allocation8 + $0xec] ss:$16 sps:$4 sm:$0xff]  }
  0x45   :  { %v1646_v39 = vld [vmem:[#allocation8 + $0x244] ss:$16 sps:$4 sm:$0xff]   ;;  %v1644_v41 = vld [vmem:[#allocation8 + $0x240] ss:$16 sps:$4 sm:$0xff]  }
  0x46   :  { %1444 = vmatmul.mubr.msk.bf16.vlgmr.msra.gmra.mxu0 %vm200_vm0, %v1610_v19  ;;  %1445 = vmatmul.mubr.msk.bf16.vlgmr.msra.gmra.mxu1 %vm200_vm0, %v1610_v19  ;;  %v1649_v42 = vld [vmem:[#allocation8 + $0x24] ss:$16 sps:$4 sm:$0xff]   ;;  %v1647_v44 = vld [vmem:[#allocation8 + $0x20] ss:$16 sps:$4 sm:$0xff]   ;;  %v1712_v19 = vld [vmem:[#allocation8 + $0x2ec] ss:$16 sps:$4 sm:$0xff]  }
  0x47   :  { %1157 = vmatpush1.bf16.msra.mxu0 %v1611_v20  ;;  %1200 = vmatpush1.bf16.msra.mxu1 %v1614_v21  ;;  %v1652_v43 = vld [vmem:[#allocation8 + $0x224] ss:$16 sps:$4 sm:$0xff]   ;;  %v1650_v45 = vld [vmem:[#allocation8 + $0x220] ss:$16 sps:$4 sm:$0xff]   ;;  %v95_v20 = vlaneseq }
  0x48   :  { %1158 = vmatprep.subr.bf16.mxu0 %v1619_v22  ;;  %1201 = vmatprep.subr.bf16.mxu1 %v1622_v23  ;;  %v1655_v46 = vld [vmem:[#allocation8 + $0x4] ss:$16 sps:$4 sm:$0xff]   ;;  %v1653_v48 = vld [vmem:[#allocation8] ss:$16 sps:$4 sm:$0xff]  }
  0x49   :  { %v1658_v47 = vld [vmem:[#allocation8 + $0x204] ss:$16 sps:$4 sm:$0xff]   ;;  %v1656_v49 = vld [vmem:[#allocation8 + $0x200] ss:$16 sps:$4 sm:$0xff]   ;;  %v2003_v21 = vshrl.u32 %v95_v20, 7 }
  0x4a   :  { %v1661_v50 = vld [vmem:[#allocation8 + $0x1e4] ss:$16 sps:$4 sm:$0xff]   ;;  %v1659_v52 = vld [vmem:[#allocation8 + $0x1e0] ss:$16 sps:$4 sm:$0xff]  }
  0x4b   :  { %1159 = vmatpush1.bf16.msra.mxu0 %v1617_v24  ;;  %1202 = vmatpush1.bf16.msra.mxu1 %v1620_v25  ;;  %v1664_v51 = vld [vmem:[#allocation8 + $0x3e4] ss:$16 sps:$4 sm:$0xff]   ;;  %v1662_v53 = vld [vmem:[#allocation8 + $0x3e0] ss:$16 sps:$4 sm:$0xff]   ;;  %v97_v22 = vsub.s32 0, %v2003_v21  ;;  %v105_v23 = vsub.s32 2, %v2003_v21 }
  0x4c   :  { %1160 = vmatprep.subr.bf16.mxu0 %v1625_v26  ;;  %1203 = vmatprep.subr.bf16.mxu1 %v1628_v27  ;;  %v1667_v54 = vld [vmem:[#allocation8 + $0x1c4] ss:$16 sps:$4 sm:$0xff]   ;;  %v1665_v56 = vld [vmem:[#allocation8 + $0x1c0] ss:$16 sps:$4 sm:$0xff]   ;;  %v93_v24 = vld [vmem:[#allocation7] sm:$0xf] }
  0x4d   :  { %v1670_v55 = vld [vmem:[#allocation8 + $0x3c4] ss:$16 sps:$4 sm:$0xff]   ;;  %v1668_v57 = vld [vmem:[#allocation8 + $0x3c0] ss:$16 sps:$4 sm:$0xff]   ;;  %v101_v25 = vsub.s32 1, %v2003_v21  ;;  %v109_v26 = vsub.s32 3, %v2003_v21  ;;  %v98_v27 = vrot.slane %v93_v24, %v97_v22 }
  0x4e   :  { %v1673_v58 = vld [vmem:[#allocation8 + $0x1a4] ss:$16 sps:$4 sm:$0xff]   ;;  %v1671_v60 = vld [vmem:[#allocation8 + $0x1a0] ss:$16 sps:$4 sm:$0xff]  }
  0x4f   :  { %1161 = vmatpush1.bf16.msra.mxu0 %v1623_v28  ;;  %1204 = vmatpush1.bf16.msra.mxu1 %v1626_v29  ;;  %v1676_v59 = vld [vmem:[#allocation8 + $0x3a4] ss:$16 sps:$4 sm:$0xff]   ;;  %v1674_v61 = vld [vmem:[#allocation8 + $0x3a0] ss:$16 sps:$4 sm:$0xff]   ;;  %v106_v28 = vrot.slane %v93_v24, %v105_v23  ;;  %v102_v29 = vrot.slane %v93_v24, %v101_v25 }
  0x50   :  { %1162 = vmatprep.subr.bf16.mxu0 %v1631_v30  ;;  %1205 = vmatprep.subr.bf16.mxu1 %v1634_v31  ;;  %v1677_v62 = vld [vmem:[#allocation8 + $0x180] ss:$16 sps:$4 sm:$0xff]   ;;  %v1679_v63 = vld [vmem:[#allocation8 + $0x184] ss:$16 sps:$4 sm:$0xff]   ;;  %v110_v30 = vrot.slane %v93_v24, %v109_v26 }
  0x51   :  { %v1680_v0 = vld [vmem:[#allocation8 + $0x380] ss:$16 sps:$4 sm:$0xff]   ;;  %v1682_v1 = vld [vmem:[#allocation8 + $0x384] ss:$16 sps:$4 sm:$0xff]  }
  0x52   :  { %v1685_v2 = vld [vmem:[#allocation8 + $0x164] ss:$16 sps:$4 sm:$0xff]   ;;  %v1683_v4 = vld [vmem:[#allocation8 + $0x160] ss:$16 sps:$4 sm:$0xff]  }
  0x53   :  { %1163 = vmatpush1.bf16.msra.mxu0 %v1629_v32  ;;  %1206 = vmatpush1.bf16.msra.mxu1 %v1632_v33  ;;  %v1688_v3 = vld [vmem:[#allocation8 + $0x364] ss:$16 sps:$4 sm:$0xff]   ;;  %v1686_v5 = vld [vmem:[#allocation8 + $0x360] ss:$16 sps:$4 sm:$0xff]  }
  0x54   :  { %1164 = vmatprep.subr.bf16.mxu0 %v1637_v34  ;;  %1207 = vmatprep.subr.bf16.mxu1 %v1640_v35  ;;  %v1691_v6 = vld [vmem:[#allocation8 + $0x144] ss:$16 sps:$4 sm:$0xff]   ;;  %v1689_v8 = vld [vmem:[#allocation8 + $0x140] ss:$16 sps:$4 sm:$0xff]  }
  0x55   :  { %v1694_v7 = vld [vmem:[#allocation8 + $0x344] ss:$16 sps:$4 sm:$0xff]   ;;  %v1692_v9 = vld [vmem:[#allocation8 + $0x340] ss:$16 sps:$4 sm:$0xff]  }
  0x56   :  { %v1697_v10 = vld [vmem:[#allocation8 + $0x124] ss:$16 sps:$4 sm:$0xff]   ;;  %v1695_v12 = vld [vmem:[#allocation8 + $0x120] ss:$16 sps:$4 sm:$0xff]  }
  0x57   :  { %1165 = vmatpush1.bf16.msra.mxu0 %v1635_v36  ;;  %1208 = vmatpush1.bf16.msra.mxu1 %v1638_v37  ;;  %v1700_v11 = vld [vmem:[#allocation8 + $0x324] ss:$16 sps:$4 sm:$0xff]   ;;  %v1698_v13 = vld [vmem:[#allocation8 + $0x320] ss:$16 sps:$4 sm:$0xff]  }
  0x58   :  { %1166 = vmatprep.subr.bf16.mxu0 %v1643_v38  ;;  %1209 = vmatprep.subr.bf16.mxu1 %v1646_v39  ;;  %v1703_v14 = vld [vmem:[#allocation8 + $0x104] ss:$16 sps:$4 sm:$0xff]   ;;  %v1701_v16 = vld [vmem:[#allocation8 + $0x100] ss:$16 sps:$4 sm:$0xff]  }
  0x59   :  { %v1706_v15 = vld [vmem:[#allocation8 + $0x304] ss:$16 sps:$4 sm:$0xff]   ;;  %v1704_v17 = vld [vmem:[#allocation8 + $0x300] ss:$16 sps:$4 sm:$0xff]  }
  0x5b   :  { %1167 = vmatpush1.bf16.msra.mxu0 %v1641_v40  ;;  %1210 = vmatpush1.bf16.msra.mxu1 %v1644_v41 }
  0x5c   :  { %1168 = vmatprep.subr.bf16.mxu0 %v1649_v42  ;;  %1211 = vmatprep.subr.bf16.mxu1 %v1652_v43 }
  0x5f   :  { %1169 = vmatpush1.bf16.msra.mxu0 %v1647_v44  ;;  %1212 = vmatpush1.bf16.msra.mxu1 %v1650_v45 }
  0x60   :  { %1170 = vmatprep.subr.bf16.mxu0 %v1655_v46  ;;  %1213 = vmatprep.subr.bf16.mxu1 %v1658_v47 }
  0x63   :  { %1171 = vmatpush1.bf16.msra.mxu0 %v1653_v48  ;;  %1214 = vmatpush1.bf16.msra.mxu1 %v1656_v49 }
  0x64   :  { %1172 = vmatprep.subr.bf16.mxu0 %v1661_v50  ;;  %1215 = vmatprep.subr.bf16.mxu1 %v1664_v51 }
  0x67   :  { %1173 = vmatpush2.bf16.msra.mxu0 %v1659_v52  ;;  %1216 = vmatpush2.bf16.msra.mxu1 %v1662_v53 }
  0x68   :  { %1174 = vmatprep.subr.bf16.mxu0 %v1667_v54  ;;  %1217 = vmatprep.subr.bf16.mxu1 %v1670_v55 }
  0x6b   :  { %1175 = vmatpush2.bf16.msra.mxu0 %v1665_v56  ;;  %1218 = vmatpush2.bf16.msra.mxu1 %v1668_v57 }
  0x6c   :  { %1176 = vmatprep.subr.bf16.mxu0 %v1673_v58  ;;  %1219 = vmatprep.subr.bf16.mxu1 %v1676_v59 }
  0x6f   :  { %1177 = vmatpush2.bf16.msra.mxu0 %v1671_v60  ;;  %1220 = vmatpush2.bf16.msra.mxu1 %v1674_v61 }
  0x70   :  { %1178 = vmatprep.subr.bf16.mxu0 %v1679_v63  ;;  %1221 = vmatprep.subr.bf16.mxu1 %v1682_v1 }
  0x73   :  { %1179 = vmatpush2.bf16.msra.mxu0 %v1677_v62  ;;  %1222 = vmatpush2.bf16.msra.mxu1 %v1680_v0 }
  0x74   :  { %1180 = vmatprep.subr.bf16.mxu0 %v1685_v2  ;;  %1223 = vmatprep.subr.bf16.mxu1 %v1688_v3 }
  0x77   :  { %1181 = vmatpush2.bf16.msra.mxu0 %v1683_v4  ;;  %1224 = vmatpush2.bf16.msra.mxu1 %v1686_v5 }
  0x78   :  { %1182 = vmatprep.subr.bf16.mxu0 %v1691_v6  ;;  %1225 = vmatprep.subr.bf16.mxu1 %v1694_v7 }
  0x7b   :  { %1183 = vmatpush2.bf16.msra.mxu0 %v1689_v8  ;;  %1226 = vmatpush2.bf16.msra.mxu1 %v1692_v9 }
  0x7c   :  { %1184 = vmatprep.subr.bf16.mxu0 %v1697_v10  ;;  %1227 = vmatprep.subr.bf16.mxu1 %v1700_v11 }
  0x7f   :  { %1185 = vmatpush2.bf16.msra.mxu0 %v1695_v12  ;;  %1228 = vmatpush2.bf16.msra.mxu1 %v1698_v13 }
  0x80   :  { %1186 = vmatprep.subr.bf16.mxu0 %v1703_v14  ;;  %1229 = vmatprep.subr.bf16.mxu1 %v1706_v15 }
  0x83   :  { %1187 = vmatpush2.bf16.msra.mxu0 %v1701_v16  ;;  %1230 = vmatpush2.bf16.msra.mxu1 %v1704_v17 }
  0x84   :  { %1242 = vmatprep.subr.bf16.mxu0 %v1709_v18  ;;  %1285 = vmatprep.subr.bf16.mxu1 %v1712_v19 }
 0x106   :  { %v238_v31 = vpop.f32.mrf.mxu0  ;;  %v281_v32 = vpop.f32.mrf.mxu1 }
 0x107   :  { %v2017_v33 = vadd.f32 %v238_v31, %v98_v27  ;;  %v2019_v34 = vadd.f32 %v281_v32, %v106_v28 }
 0x108   :  { %v240_v35 = vpop.f32.mrf.mxu0  ;;  %v283_v36 = vpop.f32.mrf.mxu1 }
 0x109   :  { %v298_v37 = vmul.f32 0.044715, %v2017_v33  ;;  %v300_v38 = vmul.f32 0.044715, %v2019_v34  ;;  %v241_v39 = vadd.f32 %v240_v35, %v102_v29  ;;  %v2023_v40 = vadd.f32 %v283_v36, %v110_v30 }
 0x10a   :  { %v242_v41 = vpop.f32.mrf.mxu0  ;;  %v285_v42 = vpop.f32.mrf.mxu1 }
 0x10b   :  { %v306_v43 = vmul.f32 %v298_v37, %v2017_v33  ;;  %v308_v44 = vmul.f32 %v300_v38, %v2019_v34  ;;  %v299_v45 = vmul.f32 0.044715, %v241_v39  ;;  %v301_v46 = vmul.f32 0.044715, %v2023_v40 }
 0x10c   :  { %v243_v47 = vadd.f32 %v242_v41, %v98_v27  ;;  %v2028_v48 = vadd.f32 %v285_v42, %v106_v28  ;;  %v244_v49 = vpop.f32.mrf.mxu0  ;;  %v287_v50 = vpop.f32.mrf.mxu1  ;;  %v291_v36 = vmul.f32 0.5, %v241_v39  ;;  %v290_v38 = vmul.f32 0.5, %v2017_v33 }
 0x10d   :  { %v314_v51 = vmul.f32 %v306_v43, %v2017_v33  ;;  %v316_v52 = vmul.f32 %v308_v44, %v2019_v34  ;;  %v307_v53 = vmul.f32 %v299_v45, %v241_v39  ;;  %v309_v54 = vmul.f32 %v301_v46, %v2023_v40 }
 0x10e   :  { %v302_v55 = vmul.f32 0.044715, %v243_v47  ;;  %v304_v56 = vmul.f32 0.044715, %v2028_v48  ;;  %v245_v57 = vadd.f32 %v244_v49, %v102_v29  ;;  %v288_v58 = vadd.f32 %v287_v50, %v110_v30 }
 0x10f   :  { %v322_v59 = vadd.f32 %v314_v51, %v2017_v33  ;;  %v324_v60 = vadd.f32 %v316_v52, %v2019_v34  ;;  %v315_v61 = vmul.f32 %v307_v53, %v241_v39  ;;  %v317_v62 = vmul.f32 %v309_v54, %v2023_v40 }
 0x110   :  { %v310_v63 = vmul.f32 %v302_v55, %v243_v47  ;;  %v312_v0 = vmul.f32 %v304_v56, %v2028_v48  ;;  %v303_v1 = vmul.f32 0.044715, %v245_v57  ;;  %v305_v2 = vmul.f32 0.044715, %v288_v58 }
 0x111   :  { %v330_v3 = vmul.f32 0.7978846, %v322_v59  ;;  %v332_v4 = vmul.f32 0.7978846, %v324_v60  ;;  %v323_v5 = vadd.f32 %v315_v61, %v241_v39  ;;  %v325_v11 = vadd.f32 %v317_v62, %v2023_v40 }
 0x112   :  { %v318_v6 = vmul.f32 %v310_v63, %v243_v47  ;;  %v320_v7 = vmul.f32 %v312_v0, %v2028_v48  ;;  %v311_v8 = vmul.f32 %v303_v1, %v245_v57  ;;  %v313_v9 = vmul.f32 %v305_v2, %v288_v58  ;;  %v1707_v1 = vld [vmem:[#allocation8 + $0xe8] ss:$16 sps:$4 sm:$0xff]  }
 0x113   :  { %v331_v10 = vmul.f32 0.7978846, %v323_v5  ;;  %1803 = vtanh.f32 %v330_v3  ;;  %v333_v16 = vmul.f32 0.7978846, %v325_v11  ;;  %v294_v44 = vmul.f32 0.5, %v243_v47 }
 0x114   :  { %v326_v12 = vadd.f32 %v318_v6, %v243_v47  ;;  %v328_v13 = vadd.f32 %v320_v7, %v2028_v48  ;;  %v319_v14 = vmul.f32 %v311_v8, %v245_v57  ;;  %1805 = vtanh.f32 %v332_v4  ;;  %v1710_v3 = vld [vmem:[#allocation8 + $0x2e8] ss:$16 sps:$4 sm:$0xff]   ;;  %v1718_v4 = vld [vmem:[#allocation8 + $0x2cc] ss:$16 sps:$4 sm:$0xff]  }
 0x115   :  { %v321_v15 = vmul.f32 %v313_v9, %v288_v58  ;;  %1807 = vtanh.f32 %v331_v10  ;;  %v295_v50 = vmul.f32 0.5, %v245_v57  ;;  %v296_v52 = vmul.f32 0.5, %v2028_v48  ;;  %v1716_v5 = vld [vmem:[#allocation8 + $0x2c8] ss:$16 sps:$4 sm:$0xff]   ;;  %v1721_v6 = vld [vmem:[#allocation8 + $0xac] ss:$16 sps:$4 sm:$0xff]  }
 0x116   :  { %v334_v17 = vmul.f32 0.7978846, %v326_v12  ;;  %v336_v18 = vmul.f32 0.7978846, %v328_v13  ;;  %v327_v19 = vadd.f32 %v319_v14, %v245_v57  ;;  %1809 = vtanh.f32 %v333_v16  ;;  %v1724_v7 = vld [vmem:[#allocation8 + $0x2ac] ss:$16 sps:$4 sm:$0xff]  }
 0x117   :  { %v329_v20 = vadd.f32 %v321_v15, %v288_v58  ;;  %v293_v54 = vmul.f32 0.5, %v2023_v40  ;;  %v297_v55 = vmul.f32 0.5, %v288_v58  ;;  %v292_v33 = vmul.f32 0.5, %v2019_v34  ;;  %v1715_v58 = vld [vmem:[#allocation8 + $0xcc] ss:$16 sps:$4 sm:$0xff]  }
 0x118   :  { %1811 = vtanh.f32 %v334_v17  ;;  %v335_v24 = vmul.f32 0.7978846, %v327_v19  ;;  %v1713_v34 = vld [vmem:[#allocation8 + $0xc8] ss:$16 sps:$4 sm:$0xff]   ;;  %v1727_v10 = vld [vmem:[#allocation8 + $0x8c] ss:$16 sps:$4 sm:$0xff]  }
 0x119   :  { %1813 = vtanh.f32 %v336_v18  ;;  %v337_v27 = vmul.f32 0.7978846, %v329_v20  ;;  %v1719_v8 = vld [vmem:[#allocation8 + $0xa8] ss:$16 sps:$4 sm:$0xff]   ;;  %v1730_v11 = vld [vmem:[#allocation8 + $0x28c] ss:$16 sps:$4 sm:$0xff]  }
 0x11a   :  { %1815 = vtanh.f32 %v335_v24  ;;  %v1722_v9 = vld [vmem:[#allocation8 + $0x2a8] ss:$16 sps:$4 sm:$0xff]   ;;  %v1733_v14 = vld [vmem:[#allocation8 + $0x6c] ss:$16 sps:$4 sm:$0xff]  }
 0x11b   :  { %1817 = vtanh.f32 %v337_v27  ;;  %v1725_v12 = vld [vmem:[#allocation8 + $0x88] ss:$16 sps:$4 sm:$0xff]   ;;  %v1736_v15 = vld [vmem:[#allocation8 + $0x26c] ss:$16 sps:$4 sm:$0xff]  }
 0x11c   :  { %v1728_v13 = vld [vmem:[#allocation8 + $0x288] ss:$16 sps:$4 sm:$0xff]   ;;  %v1739_v18 = vld [vmem:[#allocation8 + $0x4c] ss:$16 sps:$4 sm:$0xff]  }
 0x11d   :  { %v1731_v16 = vld [vmem:[#allocation8 + $0x68] ss:$16 sps:$4 sm:$0xff]   ;;  %v1742_v19 = vld [vmem:[#allocation8 + $0x24c] ss:$16 sps:$4 sm:$0xff]  }
 0x11e   :  { %v1734_v17 = vld [vmem:[#allocation8 + $0x268] ss:$16 sps:$4 sm:$0xff]   ;;  %v1745_v27 = vld [vmem:[#allocation8 + $0x2c] ss:$16 sps:$4 sm:$0xff]  }
 0x11f   :  { %v1737_v20 = vld [vmem:[#allocation8 + $0x48] ss:$16 sps:$4 sm:$0xff]  }
 0x120   :  { %v1804_v28 = vpop.eup %1803  ;;  %v1740_v24 = vld [vmem:[#allocation8 + $0x248] ss:$16 sps:$4 sm:$0xff]  }
 0x121   :  { %v1806_v29 = vpop.eup %1805  ;;  %v346_v45 = vadd.f32 1.0, %v1804_v28  ;;  %v1748_v28 = vld [vmem:[#allocation8 + $0x22c] ss:$16 sps:$4 sm:$0xff]  }
 0x122   :  { %v1808_v30 = vpop.eup %1807  ;;  %v348_v53 = vadd.f32 1.0, %v1806_v29  ;;  %v1743_v29 = vld [vmem:[#allocation8 + $0x28] ss:$16 sps:$4 sm:$0xff]  }
 0x123   :  { %v1810_v31 = vpop.eup %1809  ;;  %v347_v37 = vadd.f32 1.0, %v1808_v30  ;;  %v354_v63 = vmul.f32 %v346_v45, %v290_v38  ;;  %v1746_v30 = vld [vmem:[#allocation8 + $0x228] ss:$16 sps:$4 sm:$0xff]   ;;  %v1760_v38 = vld [vmem:[#allocation8 + $0x3ec] ss:$16 sps:$4 sm:$0xff]  }
 0x124   :  { %v349_v43 = vadd.f32 1.0, %v1810_v31  ;;  %v356_v57 = vmul.f32 %v348_v53, %v292_v33  ;;  %v1751_v31 = vld [vmem:[#allocation8 + $0xc] ss:$16 sps:$4 sm:$0xff]   ;;  %v1761_v45 = vld [vmem:[#allocation8 + $0x1c8] ss:$16 sps:$4 sm:$0xff]  }
 0x125   :  { %v1812_v32 = vpop.eup %1811  ;;  %v355_v59 = vmul.f32 %v347_v37, %v291_v36  ;;  %v1752_v36 = vld [vmem:[#allocation8 + $0x208] ss:$16 sps:$4 sm:$0xff]   ;;  %v1757_v37 = vld [vmem:[#allocation8 + $0x1ec] ss:$16 sps:$4 sm:$0xff]  }
 0x126   :  { %v1814_v35 = vpop.eup %1813  ;;  %v350_v41 = vadd.f32 1.0, %v1812_v32  ;;  %v357_v62 = vmul.f32 %v349_v43, %v293_v54  ;;  %v1754_v32 = vld [vmem:[#allocation8 + $0x20c] ss:$16 sps:$4 sm:$0xff]   ;;  %v1782_v33 = vld [vmem:[#allocation8 + $0x368] ss:$16 sps:$4 sm:$0xff]  }
 0x127   :  { %v1816_v42 = vpop.eup %1815  ;;  %v352_v46 = vadd.f32 1.0, %v1814_v35  ;;  %v1749_v35 = vld [vmem:[#allocation8 + $0x8] ss:$16 sps:$4 sm:$0xff]   ;;  %v1763_v43 = vld [vmem:[#allocation8 + $0x1cc] ss:$16 sps:$4 sm:$0xff]  }
 0x128   :  { %v1818_v49 = vpop.eup %1817  ;;  %v351_v51 = vadd.f32 1.0, %v1816_v42  ;;  %v358_v39 = vmul.f32 %v350_v41, %v294_v44  ;;  %v1755_v41 = vld [vmem:[#allocation8 + $0x1e8] ss:$16 sps:$4 sm:$0xff]   ;;  %v1766_v44 = vld [vmem:[#allocation8 + $0x3cc] ss:$16 sps:$4 sm:$0xff]  }
 0x129   :  { %v353_v56 = vadd.f32 1.0, %v1818_v49  ;;  %v360_v61 = vmul.f32 %v352_v46, %v296_v52  ;;  %v1758_v42 = vld [vmem:[#allocation8 + $0x3e8] ss:$16 sps:$4 sm:$0xff]   ;;  %v1769_v49 = vld [vmem:[#allocation8 + $0x1ac] ss:$16 sps:$4 sm:$0xff]  }
 0x12a   :  { %v359_v60 = vmul.f32 %v351_v51, %v295_v50  ;;  %v2045_v48 = vpack.c.bf16 %v358_v39, %v354_v63  ;;  %v1764_v46 = vld [vmem:[#allocation8 + $0x3c8] ss:$16 sps:$4 sm:$0xff]   ;;  %v1772_v50 = vld [vmem:[#allocation8 + $0x3ac] ss:$16 sps:$4 sm:$0xff]  }
 0x12b   :  { %v361_v47 = vmul.f32 %v353_v56, %v297_v55  ;;  %v2047_v40 = vpack.c.bf16 %v360_v61, %v356_v57  ;;  %v1767_v51 = vld [vmem:[#allocation8 + $0x1a8] ss:$16 sps:$4 sm:$0xff]   ;;  %v1775_v53 = vld [vmem:[#allocation8 + $0x18c] ss:$16 sps:$4 sm:$0xff]  }
 0x12c   :  { %v363_v0 = vpack.c.bf16 %v359_v60, %v355_v59  ;;  %v1770_v52 = vld [vmem:[#allocation8 + $0x3a8] ss:$16 sps:$4 sm:$0xff]   ;;  %v1778_v54 = vld [vmem:[#allocation8 + $0x38c] ss:$16 sps:$4 sm:$0xff]  }
 0x12d   :  { %v365_v2 = vpack.c.bf16 %v361_v47, %v357_v62  ;;  %v1773_v55 = vld [vmem:[#allocation8 + $0x188] ss:$16 sps:$4 sm:$0xff]   ;;  %v1781_v39 = vld [vmem:[#allocation8 + $0x16c] ss:$16 sps:$4 sm:$0xff]  }
 0x12e   :  { %1188 = vmatprep.mubr.bf16.mxu0 %v363_v0  ;;  %v1776_v56 = vld [vmem:[#allocation8 + $0x388] ss:$16 sps:$4 sm:$0xff]   ;;  %v1784_v59 = vld [vmem:[#allocation8 + $0x36c] ss:$16 sps:$4 sm:$0xff]  }
 0x12f   :  { %1231 = vmatprep.mubr.bf16.mxu1 %v365_v2  ;;  %1189 = vmatmul.mubr.bf16.vlgmr.msra.gmra.mxu0 %v2045_v48  ;;  %v1779_v60 = vld [vmem:[#allocation8 + $0x168] ss:$16 sps:$4 sm:$0xff]   ;;  %v1787_v61 = vld [vmem:[#allocation8 + $0x14c] ss:$16 sps:$4 sm:$0xff]  }
 0x130   :  { %1232 = vmatmul.mubr.bf16.vlgmr.msra.gmra.mxu1 %v2047_v40  ;;  %1243 = vmatpush1.bf16.msra.mxu0 %v1707_v1  ;;  %v1790_v62 = vld [vmem:[#allocation8 + $0x34c] ss:$16 sps:$4 sm:$0xff]   ;;  %v1785_v47 = vld [vmem:[#allocation8 + $0x148] ss:$16 sps:$4 sm:$0xff]  }
 0x131   :  { %1286 = vmatpush1.bf16.msra.mxu1 %v1710_v3  ;;  %1274 = vmatprep.mubr.bf16.mxu0 %v363_v0  ;;  %v1788_v63 = vld [vmem:[#allocation8 + $0x348] ss:$16 sps:$4 sm:$0xff]   ;;  %v1793_v0 = vld [vmem:[#allocation8 + $0x12c] ss:$16 sps:$4 sm:$0xff]  }
 0x132   :  { %1317 = vmatprep.mubr.bf16.mxu1 %v365_v2  ;;  %1244 = vmatprep.subr.bf16.mxu0 %v1715_v58  ;;  %v1796_v1 = vld [vmem:[#allocation8 + $0x32c] ss:$16 sps:$4 sm:$0xff]   ;;  %v1791_v57 = vld [vmem:[#allocation8 + $0x128] ss:$16 sps:$4 sm:$0xff]  }
 0x133   :  { %1287 = vmatprep.subr.bf16.mxu1 %v1718_v4  ;;  %v1794_v2 = vld [vmem:[#allocation8 + $0x328] ss:$16 sps:$4 sm:$0xff]   ;;  %v1799_v3 = vld [vmem:[#allocation8 + $0x10c] ss:$16 sps:$4 sm:$0xff]  }
 0x134   :  { %1245 = vmatpush1.bf16.msra.mxu0 %v1713_v34  ;;  %v1802_v58 = vld [vmem:[#allocation8 + $0x30c] ss:$16 sps:$4 sm:$0xff]   ;;  %v1797_v4 = vld [vmem:[#allocation8 + $0x108] ss:$16 sps:$4 sm:$0xff]  }
 0x135   :  { %1288 = vmatpush1.bf16.msra.mxu1 %v1716_v5  ;;  %1246 = vmatprep.subr.bf16.mxu0 %v1721_v6  ;;  %v1800_v34 = vld [vmem:[#allocation8 + $0x308] ss:$16 sps:$4 sm:$0xff]   ;;  %v2056_v5 = vld [vmem:[%s2077_s4] sm:$0xf]  ;;  %s1952_s4 = smov [#allocation10]  }
 0x136   :  { %1289 = vmatprep.subr.bf16.mxu1 %v1724_v7  ;;  %v499_v6 = vrot.slane %v2056_v5, %v97_v22  ;;  %v503_v7 = vrot.slane %v2056_v5, %v101_v25  ;;  %s1413_s15 = sshll.u32 %s1952_s4, 4  ;;  %s1414_s15 = int_to_ptr.vmem [resolvable:$true] %s1413_s15 }
 0x137   :  { %s1915_s16 = scalar_lea.vmem %s1414_s15, 1024  ;;  %p1920_p7 = scmp.lt.s32.totalorder %s1414_s15, %s1414_s15 }
 0x138   :  { %1247 = vmatpush1.bf16.msra.mxu0 %v1719_v8  ;;  %p1916_p6 = scmp.ne.s32.totalorder %s1414_s15, %s1915_s16  ;;  %p1921_p8 = scmp.lt.s32.totalorder %s1915_s16, %s1915_s16 }
 0x139   :  { %1290 = vmatpush1.bf16.msra.mxu1 %v1722_v9  ;;  %1248 = vmatprep.subr.bf16.mxu0 %v1727_v10 }
 0x13a   :  { %1291 = vmatprep.subr.bf16.mxu1 %v1730_v11  ;;  %p1922_p9 = por %p1921_p8, %p1920_p7 }
 0x13c   :  { %1249 = vmatpush1.bf16.msra.mxu0 %v1725_v12  ;;  %p1923_p10 = pnand %p1922_p9, %p1916_p6 }
 0x13d   :  { %1292 = vmatpush1.bf16.msra.mxu1 %v1728_v13  ;;  %1250 = vmatprep.subr.bf16.mxu0 %v1733_v14 }
 0x13e   :  { %1293 = vmatprep.subr.bf16.mxu1 %v1736_v15 }
 0x140   :  { %1251 = vmatpush1.bf16.msra.mxu0 %v1731_v16 }
 0x141   :  { %1294 = vmatpush1.bf16.msra.mxu1 %v1734_v17  ;;  %1252 = vmatprep.subr.bf16.mxu0 %v1739_v18 }
 0x142   :  { %1295 = vmatprep.subr.bf16.mxu1 %v1742_v19 }
 0x144   :  { %1253 = vmatpush1.bf16.msra.mxu0 %v1737_v20 }
 0x145   :  { %1296 = vmatpush1.bf16.msra.mxu1 %v1740_v24  ;;  %1254 = vmatprep.subr.bf16.mxu0 %v1745_v27 }
 0x146   :  { %1297 = vmatprep.subr.bf16.mxu1 %v1748_v28 }
 0x148   :  { %1255 = vmatpush1.bf16.msra.mxu0 %v1743_v29 }
 0x149   :  { %1298 = vmatpush1.bf16.msra.mxu1 %v1746_v30  ;;  %1256 = vmatprep.subr.bf16.mxu0 %v1751_v31 }
 0x14a   :  { %1299 = vmatprep.subr.bf16.mxu1 %v1754_v32 }
 0x14c   :  { %1257 = vmatpush1.bf16.msra.mxu0 %v1749_v35 }
 0x14d   :  { %1300 = vmatpush1.bf16.msra.mxu1 %v1752_v36  ;;  %1258 = vmatprep.subr.bf16.mxu0 %v1757_v37 }
 0x14e   :  { %1301 = vmatprep.subr.bf16.mxu1 %v1760_v38 }
 0x150   :  { %1259 = vmatpush2.bf16.msra.mxu0 %v1755_v41 }
 0x151   :  { %1302 = vmatpush2.bf16.msra.mxu1 %v1758_v42  ;;  %1260 = vmatprep.subr.bf16.mxu0 %v1763_v43 }
 0x152   :  { %1303 = vmatprep.subr.bf16.mxu1 %v1766_v44 }
 0x154   :  { %1261 = vmatpush2.bf16.msra.mxu0 %v1761_v45 }
 0x155   :  { %1304 = vmatpush2.bf16.msra.mxu1 %v1764_v46  ;;  %1262 = vmatprep.subr.bf16.mxu0 %v1769_v49 }
 0x156   :  { %1305 = vmatprep.subr.bf16.mxu1 %v1772_v50 }
 0x158   :  { %1263 = vmatpush2.bf16.msra.mxu0 %v1767_v51 }
 0x159   :  { %1306 = vmatpush2.bf16.msra.mxu1 %v1770_v52  ;;  %1264 = vmatprep.subr.bf16.mxu0 %v1775_v53 }
 0x15a   :  { %1307 = vmatprep.subr.bf16.mxu1 %v1778_v54 }
 0x15c   :  { %1265 = vmatpush2.bf16.msra.mxu0 %v1773_v55 }
 0x15d   :  { %1308 = vmatpush2.bf16.msra.mxu1 %v1776_v56  ;;  %1266 = vmatprep.subr.bf16.mxu0 %v1781_v39 }
 0x15e   :  { %1309 = vmatprep.subr.bf16.mxu1 %v1784_v59 }
 0x160   :  { %1267 = vmatpush2.bf16.msra.mxu0 %v1779_v60 }
 0x161   :  { %1310 = vmatpush2.bf16.msra.mxu1 %v1782_v33  ;;  %1268 = vmatprep.subr.bf16.mxu0 %v1787_v61 }
 0x162   :  { %1311 = vmatprep.subr.bf16.mxu1 %v1790_v62 }
 0x164   :  { %1269 = vmatpush2.bf16.msra.mxu0 %v1785_v47 }
 0x165   :  { %1312 = vmatpush2.bf16.msra.mxu1 %v1788_v63  ;;  %1270 = vmatprep.subr.bf16.mxu0 %v1793_v0 }
 0x166   :  { %1313 = vmatprep.subr.bf16.mxu1 %v1796_v1 }
 0x168   :  { %1271 = vmatpush2.bf16.msra.mxu0 %v1791_v57  ;;  %v507_v57 = vrot.slane %v2056_v5, %v105_v23 }
 0x169   :  { %1314 = vmatpush2.bf16.msra.mxu1 %v1794_v2  ;;  %1272 = vmatprep.subr.bf16.mxu0 %v1799_v3  ;;  %v511_v2 = vrot.slane %v2056_v5, %v109_v26 }
 0x16a   :  { %1315 = vmatprep.subr.bf16.mxu1 %v1802_v58 }
 0x16c   :  { %1273 = vmatpush2.bf16.msra.mxu0 %v1797_v4 }
 0x16d   :  { %1316 = vmatpush2.bf16.msra.mxu1 %v1800_v34 }
 0x16f   :  { %1275 = vmatmul.mubr.bf16.vlgmr.msra.gmra.mxu0 %v2045_v48 }
 0x170   :  { %1318 = vmatmul.mubr.bf16.vlgmr.msra.gmra.mxu1 %v2047_v40 }
 0x1ef   :  { %v1190_v8 = vpop.f32.mrf.mxu0 }
 0x1f0   :  { %v1191_v9 = vadd.f32 %v1190_v8, %v499_v6  ;;  %v1233_v10 = vpop.f32.mrf.mxu1 }
 0x1f1   :  { %v1192_v11 = vpop.f32.mrf.mxu0 }
 0x1f2   :  { %v1234_v48 = vadd.f32 %v1233_v10, %v1191_v9  ;;  %v1193_v12 = vadd.f32 %v1192_v11, %v503_v7  ;;  %v1235_v40 = vpop.f32.mrf.mxu1 }
 0x1f3   :  { %v1194_v13 = vpop.f32.mrf.mxu0 }
 0x1f4   :  { %v1336_v14 = vmul.f32 0.044715, %v1234_v48  ;;  %v1236_v15 = vadd.f32 %v1235_v40, %v1193_v12  ;;  %v1195_v16 = vadd.f32 %v1194_v13, %v499_v6  ;;  %v1237_v17 = vpop.f32.mrf.mxu1  ;;  %v1328_v52 = vmul.f32 0.5, %v1234_v48 }
 0x1f5   :  { %v1196_v18 = vpop.f32.mrf.mxu0 }
 0x1f6   :  { %v1344_v19 = vmul.f32 %v1336_v14, %v1234_v48  ;;  %v1337_v20 = vmul.f32 0.044715, %v1236_v15  ;;  %v1238_v22 = vadd.f32 %v1237_v17, %v1195_v16  ;;  %v1197_v24 = vadd.f32 %v1196_v18, %v503_v7  ;;  %v1239_v29 = vpop.f32.mrf.mxu1 }
 0x1f7   :  { %v1329_v56 = vmul.f32 0.5, %v1236_v15 }
 0x1f8   :  { %v1352_v27 = vmul.f32 %v1344_v19, %v1234_v48  ;;  %v1345_v28 = vmul.f32 %v1337_v20, %v1236_v15  ;;  %v1340_v25 = vmul.f32 0.044715, %v1238_v22  ;;  %v1240_v30 = vadd.f32 %v1239_v29, %v1197_v24 }
 0x1f9   :  { %v1332_v33 = vmul.f32 0.5, %v1238_v22 }
 0x1fa   :  { %v1360_v31 = vadd.f32 %v1352_v27, %v1234_v48  ;;  %v1353_v32 = vmul.f32 %v1345_v28, %v1236_v15  ;;  %v1348_v35 = vmul.f32 %v1340_v25, %v1238_v22  ;;  %v1341_v36 = vmul.f32 0.044715, %v1240_v30 }
 0x1fb   :  { %v1333_v63 = vmul.f32 0.5, %v1240_v30 }
 0x1fc   :  { %v1368_v37 = vmul.f32 0.7978846, %v1360_v31  ;;  %v1361_v38 = vadd.f32 %v1353_v32, %v1236_v15  ;;  %v1356_v41 = vmul.f32 %v1348_v35, %v1238_v22  ;;  %v1349_v42 = vmul.f32 %v1341_v36, %v1240_v30 }
 0x1fe   :  { %1819 = vtanh.f32 %v1368_v37  ;;  %v1369_v43 = vmul.f32 0.7978846, %v1361_v38  ;;  %v1364_v44 = vadd.f32 %v1356_v41, %v1238_v22  ;;  %v1357_v45 = vmul.f32 %v1349_v42, %v1240_v30 }
 0x200   :  { %1821 = vtanh.f32 %v1369_v43  ;;  %v1372_v46 = vmul.f32 0.7978846, %v1364_v44  ;;  %v1365_v49 = vadd.f32 %v1357_v45, %v1240_v30 }
 0x202   :  { %1823 = vtanh.f32 %v1372_v46  ;;  %v1373_v50 = vmul.f32 0.7978846, %v1365_v49 }
 0x204   :  { %1825 = vtanh.f32 %v1373_v50 }
 0x20b   :  { %v1820_v51 = vpop.eup %1819 }
 0x20c   :  { %v1384_v53 = vadd.f32 1.0, %v1820_v51 }
 0x20d   :  { %v1822_v54 = vpop.eup %1821 }
 0x20e   :  { %v1392_v55 = vmul.f32 %v1384_v53, %v1328_v52  ;;  %v1385_v39 = vadd.f32 1.0, %v1822_v54 }
 0x20f   :  { %v1824_v59 = vpop.eup %1823 }
 0x210   :  { %1400 = vst [vmem:[#allocation10] sm:$0xff] %v1392_v55  ;;  %v1393_v60 = vmul.f32 %v1385_v39, %v1329_v56  ;;  %v1388_v61 = vadd.f32 1.0, %v1824_v59 }
 0x211   :  { %v1826_v62 = vpop.eup %1825 }
 0x212   :  { %1401 = vst [vmem:[#allocation10 + $0x8] sm:$0xff] %v1393_v60  ;;  %v1396_v47 = vmul.f32 %v1388_v61, %v1332_v33  ;;  %v1389_v0 = vadd.f32 1.0, %v1826_v62 }
 0x214   :  { %1404 = vst [vmem:[#allocation10 + $0x20] sm:$0xff] %v1396_v47  ;;  %v1397_v1 = vmul.f32 %v1389_v0, %v1333_v63 }
 0x216   :  { %1405 = vst [vmem:[#allocation10 + $0x28] sm:$0xff] %v1397_v1 }
 0x22f   :  { %v1276_v3 = vpop.f32.mrf.mxu0 }
 0x230   :  { %v1277_v58 = vadd.f32 %v1276_v3, %v507_v57  ;;  %v1319_v4 = vpop.f32.mrf.mxu1 }
 0x231   :  { %v1278_v34 = vpop.f32.mrf.mxu0 }
 0x232   :  { %v1320_v6 = vadd.f32 %v1319_v4, %v1277_v58  ;;  %v1279_v7 = vadd.f32 %v1278_v34, %v511_v2  ;;  %v1321_v8 = vpop.f32.mrf.mxu1 }
 0x233   :  { %v1280_v9 = vpop.f32.mrf.mxu0 }
 0x234   :  { %v1338_v10 = vmul.f32 0.044715, %v1320_v6  ;;  %v1322_v11 = vadd.f32 %v1321_v8, %v1279_v7  ;;  %v1281_v48 = vadd.f32 %v1280_v9, %v507_v57  ;;  %v1323_v12 = vpop.f32.mrf.mxu1  ;;  %v1330_v38 = vmul.f32 0.5, %v1320_v6 }
 0x235   :  { %v1282_v40 = vpop.f32.mrf.mxu0 }
 0x236   :  { %v1346_v13 = vmul.f32 %v1338_v10, %v1320_v6  ;;  %v1339_v14 = vmul.f32 0.044715, %v1322_v11  ;;  %v1324_v23 = vadd.f32 %v1323_v12, %v1281_v48  ;;  %v1283_v15 = vadd.f32 %v1282_v40, %v511_v2  ;;  %v1325_v5 = vpop.f32.mrf.mxu1 }
 0x237   :  { %v1331_v44 = vmul.f32 0.5, %v1322_v11 }
 0x238   :  { %v1354_v21 = vmul.f32 %v1346_v13, %v1320_v6  ;;  %v1347_v16 = vmul.f32 %v1339_v14, %v1322_v11  ;;  %v1342_v26 = vmul.f32 0.044715, %v1324_v23  ;;  %v1326_v17 = vadd.f32 %v1325_v5, %v1283_v15 }
 0x239   :  { %v1334_v50 = vmul.f32 0.5, %v1324_v23 }
 0x23a   :  { %v1362_v18 = vadd.f32 %v1354_v21, %v1320_v6  ;;  %v1355_v19 = vmul.f32 %v1347_v16, %v1322_v11  ;;  %v1350_v20 = vmul.f32 %v1342_v26, %v1324_v23  ;;  %v1343_v22 = vmul.f32 0.044715, %v1326_v17 }
 0x23b   :  { %v1335_v54 = vmul.f32 0.5, %v1326_v17 }
 0x23c   :  { %v1370_v24 = vmul.f32 0.7978846, %v1362_v18  ;;  %v1363_v27 = vadd.f32 %v1355_v19, %v1322_v11  ;;  %v1358_v28 = vmul.f32 %v1350_v20, %v1324_v23  ;;  %v1351_v25 = vmul.f32 %v1343_v22, %v1326_v17 }
 0x23e   :  { %1827 = vtanh.f32 %v1370_v24  ;;  %v1371_v29 = vmul.f32 0.7978846, %v1363_v27  ;;  %v1366_v30 = vadd.f32 %v1358_v28, %v1324_v23  ;;  %v1359_v31 = vmul.f32 %v1351_v25, %v1326_v17 }
 0x240   :  { %1829 = vtanh.f32 %v1371_v29  ;;  %v1374_v32 = vmul.f32 0.7978846, %v1366_v30  ;;  %v1367_v35 = vadd.f32 %v1359_v31, %v1326_v17 }
 0x242   :  { %1831 = vtanh.f32 %v1374_v32  ;;  %v1375_v36 = vmul.f32 0.7978846, %v1367_v35 }
 0x244   :  { %1833 = vtanh.f32 %v1375_v36 }
 0x24b   :  { %v1828_v37 = vpop.eup %1827 }
 0x24c   :  { %v1386_v41 = vadd.f32 1.0, %v1828_v37 }
 0x24d   :  { %v1830_v42 = vpop.eup %1829 }
 0x24e   :  { %v1394_v43 = vmul.f32 %v1386_v41, %v1330_v38  ;;  %v1387_v45 = vadd.f32 1.0, %v1830_v42 }
 0x24f   :  { %v1832_v46 = vpop.eup %1831 }
 0x250   :  { %1402 = vst [vmem:[#allocation10 + $0x10] sm:$0xff] %v1394_v43  ;;  %v1395_v49 = vmul.f32 %v1387_v45, %v1331_v44  ;;  %v1390_v51 = vadd.f32 1.0, %v1832_v46 }
 0x251   :  { %v1834_v52 = vpop.eup %1833 }
 0x252   :  { %1403 = vst [vmem:[#allocation10 + $0x18] sm:$0xff] %v1395_v49  ;;  %v1398_v53 = vmul.f32 %v1390_v51, %v1334_v50  ;;  %v1391_v55 = vadd.f32 1.0, %v1834_v52 }
 0x254   :  { %1406 = vst [vmem:[#allocation10 + $0x30] sm:$0xff] %v1398_v53  ;;  %v1399_v56 = vmul.f32 %v1391_v55, %v1335_v54 }
 0x256   :  { %1407 = vst [vmem:[#allocation10 + $0x38] sm:$0xff] %v1399_v56 }
 0x257   :  { %1926 = shalt.err (!%p1923_p10)
}
 0x258   :  { %s1953_s17 = smov 512   ;;  %s1954_s18 = smov 32  }
 0x259   :  { %1419 = dma.vmem_to_hbm [thread:$0]  %s1414_s15, 1024, %s2078_s5, [#allocation4], %s1953_s17, %s1953_s17, %s1954_s18  }
 0x25a   :  { %1941 = dma.done.wait [#allocation4], 1024  }
 0x25b   :  { %1942 = vsyncadd [#allocation4], 4294966272 }
 0x25c   :  { %1423 = vsyncpa [#allocation3], 1 }
 0x25d   :  { %1424 = vsyncpa [#allocation6], 1 }
 0x25e   :  { %1425 = vsyncpa [#allocation9], 1 }
 0x25f   :  { %1426 = vsyncpa [#allocation4], 1 }

</bundles_post_ra>
